<compile_context>
chip_gen: v7x
topology: tpu7x:2x2x1
jax: 0.10.0
libtpu: 0.0.40
codegen_flags: <defaults>
</compile_context>

<pallas_src>
import jax
import jax.numpy as jnp
from jax.experimental import pallas as pl
from jax.experimental.pallas import tpu as pltpu


def _round_up(x, m):
    return (x + m - 1) // m * m


def rnn_lm_kernel(emb_ref, h0_ref, wih_ref, whh_ref, brnn_ref, wfc_ref, bfc_ref,
                  logits_ref, hout_ref, xh_ref, hall_ref):
    """Fused RNN LM forward; grid axis 0 tiles the FC over the vocab dim.

    emb_ref    : (T*Bp, Ep)    bf16  time-major padded embeddings (constant block)
    h0_ref     : (Bp, H)       f32   initial hidden state (padded batch)
    wih_ref    : (Ep, H)       bf16  W_ih^T (rows E..Ep-1 zero)
    whh_ref    : (H, H)        bf16  W_hh^T
    brnn_ref   : (1, H)        f32   b_ih + b_hh
    wfc_ref    : (H, TILE_V)   bf16  current vocab tile of W_fc^T
    bfc_ref    : (1, TILE_V)   f32   current vocab tile of b_fc
    logits_ref : (T*Bp, TILE_V)      current vocab tile of the logits
    hout_ref   : (Bp, H)       f32   final hidden state output
    xh_ref     : (T*Bp, H)     f32   scratch: input projection, overwritten in
                                     place with the per-step hidden states
    hall_ref   : (T*Bp, H)     bf16  scratch: all hidden states (FC operand)
    """
    Bp, H = h0_ref.shape
    T = emb_ref.shape[0] // Bp

    # ---- recurrence: runs once (first vocab tile); results persist in scratch ----
    @pl.when(pl.program_id(0) == 0)
    def _recurrence():
        # 1) Input projection for ALL time steps: one big MXU matmul (bf16->f32).
        xh_ref[...] = (
            jnp.dot(emb_ref[...], wih_ref[...], preferred_element_type=jnp.float32)
            + brnn_ref[...])

        whh = whh_ref[...]                                  # (H, H) bf16, hoisted

        # 2) Serial recurrence; only tanh(x_t + h @ W_hh^T) is on the critical
        #    path.  The row-block of xh is reused in place for h_t (merged scratch).
        def step(t, h_prev):                                # h_prev: (Bp, H) f32
            off = pl.multiple_of(t * Bp, Bp)
            x_t = xh_ref[pl.ds(off, Bp), :]                 # (Bp, H) f32
            h_new = jnp.tanh(
                x_t + jnp.dot(h_prev.astype(jnp.bfloat16), whh,
                              preferred_element_type=jnp.float32))
            xh_ref[pl.ds(off, Bp), :] = h_new
            return h_new

        unroll = max(1, min(8, T))                          # partial unroll
        h_last = jax.lax.fori_loop(0, T, step, h0_ref[...], unroll=unroll)
        hout_ref[...] = h_last

        # One bulk f32->bf16 cast; the tiled FC then reads bf16 directly.
        hall_ref[...] = xh_ref[...].astype(jnp.bfloat16)

    # ---- 3) FC for this vocab tile (dropout is identity in eval mode). ----
    logits_ref[...] = (
        jnp.dot(hall_ref[...], wfc_ref[...], preferred_element_type=jnp.float32)
        + bfc_ref[...]).astype(logits_ref.dtype)


def rnn_language_model_forward(x, hidden, params, *, tile_v=256,
                               logits_dtype=jnp.float32):
    """x: (B, T) int32 token ids; hidden: (1, B, H) float32.

    Returns (logits (B, T, V) f32, hidden (1, B, H) f32), matching the PyTorch
    module in eval mode (weights quantized to bf16, f32 accumulation).
    """
    emb_table = params["embedding"]          # (V, E)
    w_ih = params["w_ih"]                    # (H, E)  PyTorch layout
    w_hh = params["w_hh"]                    # (H, H)
    b_ih = params["b_ih"]                    # (H,)
    b_hh = params["b_hh"]                    # (H,)
    w_fc = params["w_fc"]                    # (V, H)
    b_fc = params["b_fc"]                    # (V,)

    B, T = x.shape
    V, E = emb_table.shape
    H = w_ih.shape[0]

    Bp = _round_up(B, 8)                     # sublane alignment
    Ep = _round_up(E, 128)                   # lane alignment (contraction dim)
    TILE_V = max(256, _round_up(tile_v, 256))   # full MXU width on v6e/v7x
    Vp = _round_up(V, TILE_V)
    NV = Vp // TILE_V

    # --- glue: gather straight into padded, time-major bf16 (no f32 (B,T,E) pass) ---
    tbl = jnp.pad(emb_table, ((0, 0), (0, Ep - E))).astype(jnp.bfloat16)   # (V, Ep)
    emb_tm = jnp.take(tbl, x.T, axis=0)                        # (T, B, Ep) bf16
    emb_tm = jnp.pad(emb_tm, ((0, 0), (0, Bp - B), (0, 0)))    # (T, Bp, Ep)
    emb_flat = emb_tm.reshape(T * Bp, Ep)

    h0 = jnp.pad(hidden[0], ((0, Bp - B), (0, 0))).astype(jnp.float32)      # (Bp, H)

    wih_t = jnp.pad(w_ih.T, ((0, Ep - E), (0, 0))).astype(jnp.bfloat16)     # (Ep, H)
    whh_t = w_hh.T.astype(jnp.bfloat16)                                     # (H, H)
    wfc_t = jnp.pad(w_fc.T, ((0, 0), (0, Vp - V))).astype(jnp.bfloat16)     # (H, Vp)
    b_rnn = (b_ih + b_hh).reshape(1, H).astype(jnp.float32)                 # (1, H)
    b_out = jnp.pad(b_fc, (0, Vp - V)).reshape(1, Vp).astype(jnp.float32)   # (1, Vp)

    # --- VMEM budget: constant blocks (2x auto double-buffer), tiled vocab blocks
    #     (2x), outputs and the two scratches.  Passed as the scoped-VMEM limit so
    #     the default 16/32 MiB caps do not throttle realistic T / V. ---
    lsz = jnp.dtype(logits_dtype).itemsize
    footprint = (
        2 * (T * Bp * Ep * 2)            # emb (bf16)
        + 2 * (Bp * H * 4)               # h0
        + 2 * (Ep * H * 2)               # W_ih^T
        + 2 * (H * H * 2)                # W_hh^T
        + 2 * (8 * H * 4)                # b_rnn (sublane-padded)
        + 2 * (H * TILE_V * 2)           # W_fc^T tile (double-buffered)
        + 2 * (8 * TILE_V * 4)           # b_fc tile
        + 2 * (T * Bp * TILE_V * lsz)    # logits tile (double-buffered)
        + 2 * (Bp * H * 4)               # final hidden output
        + T * Bp * H * 4                 # xh scratch (f32)
        + T * Bp * H * 2                 # hall scratch (bf16)
    )
    vmem_limit = int(min(max(footprint * 1.3 + (4 << 20), 32 << 20), 128 << 20))

    grid_spec = pltpu.PrefetchScalarGridSpec(
        num_scalar_prefetch=0,
        grid=(NV,),                                         # vocab tiles of the FC
        in_specs=[
            pl.BlockSpec((T * Bp, Ep), lambda j: (0, 0)),   # embeddings (constant)
            pl.BlockSpec((Bp, H), lambda j: (0, 0)),        # h0
            pl.BlockSpec((Ep, H), lambda j: (0, 0)),        # W_ih^T
            pl.BlockSpec((H, H), lambda j: (0, 0)),         # W_hh^T
            pl.BlockSpec((1, H), lambda j: (0, 0)),         # b_ih + b_hh
            pl.BlockSpec((H, TILE_V), lambda j: (0, j)),    # W_fc^T tile (pipelined)
            pl.BlockSpec((1, TILE_V), lambda j: (0, j)),    # b_fc tile
        ],
        out_specs=[
            pl.BlockSpec((T * Bp, TILE_V), lambda j: (0, j)),  # logits tile
            pl.BlockSpec((Bp, H), lambda j: (0, 0)),           # final hidden
        ],
        scratch_shapes=[
            pltpu.VMEM((T * Bp, H), jnp.float32),           # xproj -> hidden (in place)
            pltpu.VMEM((T * Bp, H), jnp.bfloat16),          # hidden states (FC operand)
        ],
    )

    logits_flat, h_out_p = pl.pallas_call(
        rnn_lm_kernel,
        out_shape=(
            jax.ShapeDtypeStruct((T * Bp, Vp), logits_dtype),
            jax.ShapeDtypeStruct((Bp, H), jnp.float32),
        ),
        grid_spec=grid_spec,
        compiler_params=pltpu.CompilerParams(
            dimension_semantics=("arbitrary",),     # vocab tiles share recurrence scratch
            vmem_limit_bytes=vmem_limit,
        ),
    )(emb_flat, h0, wih_t, whh_t, b_rnn, wfc_t, b_out)

    # un-pad and go back to batch_first
    logits = logits_flat.reshape(T, Bp, Vp)[:, :B, :V].astype(jnp.float32)  # (T, B, V)
    logits = jnp.transpose(logits, (1, 0, 2))                               # (B, T, V)
    h_out = h_out_p[:B][None]                                               # (1, B, H)
    return logits, h_out


def _reference_forward_f32(x, hidden, params):
    """Pure-JAX, full-f32 reference (exact PyTorch eval-mode semantics)."""
    emb = jnp.take(params["embedding"], x, axis=0)            # (B, T, E)
    w_ih, w_hh = params["w_ih"], params["w_hh"]
    b = params["b_ih"] + params["b_hh"]

    def step(h, x_t):                                         # x_t: (B, E)
        h_new = jnp.tanh(x_t @ w_ih.T + h @ w_hh.T + b)
        return h_new, h_new

    h_last, outs = jax.lax.scan(step, hidden[0], jnp.transpose(emb, (1, 0, 2)))
    outs = jnp.transpose(outs, (1, 0, 2))                     # (B, T, H)
    logits = outs @ params["w_fc"].T + params["b_fc"]
    return logits, h_last[None]


def _reference_forward_mixed(x, hidden, params):
    """Pure-JAX reference with the SAME bf16 weight/activation quantization and
    f32 accumulation as the Pallas kernel (tight numerical check)."""
    emb = jnp.take(params["embedding"], x, axis=0).astype(jnp.bfloat16)
    wih_t = params["w_ih"].T.astype(jnp.bfloat16)
    whh_t = params["w_hh"].T.astype(jnp.bfloat16)
    wfc_t = params["w_fc"].T.astype(jnp.bfloat16)
    b = (params["b_ih"] + params["b_hh"]).astype(jnp.float32)

    def step(h, e_t):                                         # e_t: (B, E) bf16
        pre = (jnp.dot(e_t, wih_t, preferred_element_type=jnp.float32) + b
               + jnp.dot(h.astype(jnp.bfloat16), whh_t,
                         preferred_element_type=jnp.float32))
        h_new = jnp.tanh(pre)
        return h_new, h_new

    h_last, outs = jax.lax.scan(step, hidden[0], jnp.transpose(emb, (1, 0, 2)))
    logits = (jnp.dot(outs.astype(jnp.bfloat16), wfc_t,
                      preferred_element_type=jnp.float32)
              + params["b_fc"])                               # (T, B, V)
    logits = jnp.transpose(logits, (1, 0, 2))                 # (B, T, V)
    return logits, h_last[None]


def init_params(key, vocab_size, embedding_dim, hidden_dim):
    ks = jax.random.split(key, 7)
    k = 1.0 / jnp.sqrt(hidden_dim)
    return {
        "embedding": jax.random.normal(ks[0], (vocab_size, embedding_dim), jnp.float32),
        "w_ih": jax.random.uniform(ks[1], (hidden_dim, embedding_dim), jnp.float32, -k, k),
        "w_hh": jax.random.uniform(ks[2], (hidden_dim, hidden_dim), jnp.float32, -k, k),
        "b_ih": jax.random.uniform(ks[3], (hidden_dim,), jnp.float32, -k, k),
        "b_hh": jax.random.uniform(ks[4], (hidden_dim,), jnp.float32, -k, k),
        "w_fc": jax.random.uniform(ks[5], (vocab_size, hidden_dim), jnp.float32, -k, k),
        "b_fc": jax.random.uniform(ks[6], (vocab_size,), jnp.float32, -k, k),
    }


if __name__ == "__main__":
    VOCAB, EMB, HID = 64, 100, 256
    B, T = 2, 8

    key = jax.random.PRNGKey(0)
    k_param, k_tok = jax.random.split(key)
    params = init_params(k_param, VOCAB, EMB, HID)

    x = jax.random.randint(k_tok, (B, T), 0, VOCAB, dtype=jnp.int32)
    hidden0 = jnp.zeros((1, B, HID), jnp.float32)   # == init_hidden

    logits, h_out = rnn_language_model_forward(x, hidden0, params)
    logits = jax.block_until_ready(logits)
    h_out = jax.block_until_ready(h_out)

    assert logits.shape == (B, T, VOCAB)
    assert h_out.shape == (1, B, HID)

    # Tight check against a reference using identical bf16 quantization.
    m_logits, m_hidden = _reference_forward_mixed(x, hidden0, params)
    assert jnp.allclose(logits, m_logits, atol=2e-3, rtol=2e-3)
    assert jnp.allclose(h_out, m_hidden, atol=2e-3, rtol=2e-3)

    # Loose sanity check against the exact f32 module semantics.
    f_logits, f_hidden = _reference_forward_f32(x, hidden0, params)
    assert jnp.allclose(logits, f_logits, atol=5e-2, rtol=5e-2)
    assert jnp.allclose(h_out, f_hidden, atol=5e-2, rtol=5e-2)

    print("KERNEL_OK")
</pallas_src>

<mosaic_0001>
module attributes {stable_mosaic.version = 11 : i64} {
  func.func @rnn_lm_kernel(%arg0: i32, %arg1: memref<64x128xbf16, #tpu.memory_space<vmem>>, %arg2: memref<8x256xf32, #tpu.memory_space<vmem>>, %arg3: memref<128x256xbf16, #tpu.memory_space<vmem>>, %arg4: memref<256x256xbf16, #tpu.memory_space<vmem>>, %arg5: memref<1x256xf32, #tpu.memory_space<vmem>>, %arg6: memref<256x256xbf16, #tpu.memory_space<vmem>>, %arg7: memref<1x256xf32, #tpu.memory_space<vmem>>, %arg8: memref<64x256xf32, #tpu.memory_space<vmem>>, %arg9: memref<8x256xf32, #tpu.memory_space<vmem>>, %arg10: memref<64x256xf32, #tpu.memory_space<vmem>>, %arg11: memref<64x256xbf16, #tpu.memory_space<vmem>>) attributes {dimension_semantics = [#tpu.dimension_semantics<arbitrary>], iteration_bounds = array<i64: 1>, scalar_prefetch = 0 : i64, scratch_operands = 2 : i64, tpu.core_type = #tpu.core_type<tc>, window_params = [{pipeline_mode = #tpu.pipeline_mode<synchronous>, transform_indices = @transform_0, window_bounds = array<i64: 64, 128>}, {pipeline_mode = #tpu.pipeline_mode<synchronous>, transform_indices = @transform_1, window_bounds = array<i64: 8, 256>}, {pipeline_mode = #tpu.pipeline_mode<synchronous>, transform_indices = @transform_2, window_bounds = array<i64: 128, 256>}, {pipeline_mode = #tpu.pipeline_mode<synchronous>, transform_indices = @transform_3, window_bounds = array<i64: 256, 256>}, {pipeline_mode = #tpu.pipeline_mode<synchronous>, transform_indices = @transform_4, window_bounds = array<i64: 1, 256>}, {transform_indices = @transform_5, window_bounds = array<i64: 256, 256>}, {transform_indices = @transform_6, window_bounds = array<i64: 1, 256>}, {transform_indices = @transform_7, window_bounds = array<i64: 64, 256>}, {pipeline_mode = #tpu.pipeline_mode<synchronous>, transform_indices = @transform_8, window_bounds = array<i64: 8, 256>}]} {
    %c0_i32 = arith.constant 0 : i32
    %0 = arith.cmpi eq, %arg0, %c0_i32 : i32
    %1 = arith.extui %0 : i1 to i32
    %c0_i32_0 = arith.constant 0 : i32
    %2 = arith.cmpi ne, %1, %c0_i32_0 : i32
    scf.if %2 {
      %c0_8 = arith.constant 0 : index
      %c0_9 = arith.constant 0 : index
      %10 = vector.load %arg1[%c0_8, %c0_9] : memref<64x128xbf16, #tpu.memory_space<vmem>>, vector<64x128xbf16>
      %c0_10 = arith.constant 0 : index
      %c0_11 = arith.constant 0 : index
      %11 = vector.load %arg3[%c0_10, %c0_11] : memref<128x256xbf16, #tpu.memory_space<vmem>>, vector<128x256xbf16>
      %cst_12 = arith.constant dense<0.000000e+00> : vector<64x256xf32>
      %12 = tpu.matmul %10, %11, %cst_12 {dimension_numbers = #tpu.dot_dimension_numbers<[1], [0], [0], [1], [0, 0, 1, 1], [], []>} : vector<64x128xbf16>, vector<128x256xbf16>, vector<64x256xf32> -> vector<64x256xf32>
      %c0_13 = arith.constant 0 : index
      %c0_14 = arith.constant 0 : index
      %13 = vector.load %arg5[%c0_13, %c0_14] : memref<1x256xf32, #tpu.memory_space<vmem>>, vector<1x256xf32>
      %14 = vector.broadcast %13 : vector<1x256xf32> to vector<64x256xf32>
      %15 = arith.addf %12, %14 : vector<64x256xf32>
      %c0_15 = arith.constant 0 : index
      %c0_16 = arith.constant 0 : index
      %16 = vector.load %arg10[%c0_15, %c0_16] : memref<64x256xf32, #tpu.memory_space<vmem>>, vector<64x256xf32>
      tpu.vector_store %arg10[%c0_15, %c0_16], %15 {strides = array<i32>} : memref<64x256xf32, #tpu.memory_space<vmem>>, vector<64x256xf32>,
      %c0_17 = arith.constant 0 : index
      %c0_18 = arith.constant 0 : index
      %17 = vector.load %arg4[%c0_17, %c0_18] : memref<256x256xbf16, #tpu.memory_space<vmem>>, vector<256x256xbf16>
      %c0_19 = arith.constant 0 : index
      %c0_20 = arith.constant 0 : index
      %18 = vector.load %arg2[%c0_19, %c0_20] : memref<8x256xf32, #tpu.memory_space<vmem>>, vector<8x256xf32>
      %c0_i32_21 = arith.constant 0 : i32
      %c8_i32 = arith.constant 8 : i32
      %19 = arith.muli %c0_i32_21, %c8_i32 : i32
      %20 = tpu.assume_multiple %19, 8 : i32
      %21 = arith.index_cast %20 : i32 to index
      %c0_22 = arith.constant 0 : index
      %22 = vector.load %arg10[%21, %c0_22] : memref<64x256xf32, #tpu.memory_space<vmem>>, vector<8x256xf32>
      %23 = arith.truncf %18 : vector<8x256xf32> to vector<8x256xbf16>
      %cst_23 = arith.constant dense<0.000000e+00> : vector<8x256xf32>
      %24 = tpu.matmul %23, %17, %cst_23 {dimension_numbers = #tpu.dot_dimension_numbers<[1], [0], [0], [1], [0, 0, 1, 1], [], []>} : vector<8x256xbf16>, vector<256x256xbf16>, vector<8x256xf32> -> vector<8x256xf32>
      %25 = arith.addf %22, %24 : vector<8x256xf32>
      %26 = math.tanh %25 : vector<8x256xf32>
      %27 = arith.index_cast %20 : i32 to index
      %c0_24 = arith.constant 0 : index
      %28 = vector.load %arg10[%27, %c0_24] : memref<64x256xf32, #tpu.memory_space<vmem>>, vector<8x256xf32>
      tpu.vector_store %arg10[%27, %c0_24], %26 {strides = array<i32>} : memref<64x256xf32, #tpu.memory_space<vmem>>, vector<8x256xf32>,
      %c1_i32 = arith.constant 1 : i32
      %c8_i32_25 = arith.constant 8 : i32
      %29 = arith.muli %c1_i32, %c8_i32_25 : i32
      %30 = tpu.assume_multiple %29, 8 : i32
      %31 = arith.index_cast %30 : i32 to index
      %c0_26 = arith.constant 0 : index
      %32 = vector.load %arg10[%31, %c0_26] : memref<64x256xf32, #tpu.memory_space<vmem>>, vector<8x256xf32>
      %33 = arith.truncf %26 : vector<8x256xf32> to vector<8x256xbf16>
      %cst_27 = arith.constant dense<0.000000e+00> : vector<8x256xf32>
      %34 = tpu.matmul %33, %17, %cst_27 {dimension_numbers = #tpu.dot_dimension_numbers<[1], [0], [0], [1], [0, 0, 1, 1], [], []>} : vector<8x256xbf16>, vector<256x256xbf16>, vector<8x256xf32> -> vector<8x256xf32>
      %35 = arith.addf %32, %34 : vector<8x256xf32>
      %36 = math.tanh %35 : vector<8x256xf32>
      %37 = arith.index_cast %30 : i32 to index
      %c0_28 = arith.constant 0 : index
      %38 = vector.load %arg10[%37, %c0_28] : memref<64x256xf32, #tpu.memory_space<vmem>>, vector<8x256xf32>
      tpu.vector_store %arg10[%37, %c0_28], %36 {strides = array<i32>} : memref<64x256xf32, #tpu.memory_space<vmem>>, vector<8x256xf32>,
      %c2_i32 = arith.constant 2 : i32
      %c8_i32_29 = arith.constant 8 : i32
      %39 = arith.muli %c2_i32, %c8_i32_29 : i32
      %40 = tpu.assume_multiple %39, 8 : i32
      %41 = arith.index_cast %40 : i32 to index
      %c0_30 = arith.constant 0 : index
      %42 = vector.load %arg10[%41, %c0_30] : memref<64x256xf32, #tpu.memory_space<vmem>>, vector<8x256xf32>
      %43 = arith.truncf %36 : vector<8x256xf32> to vector<8x256xbf16>
      %cst_31 = arith.constant dense<0.000000e+00> : vector<8x256xf32>
      %44 = tpu.matmul %43, %17, %cst_31 {dimension_numbers = #tpu.dot_dimension_numbers<[1], [0], [0], [1], [0, 0, 1, 1], [], []>} : vector<8x256xbf16>, vector<256x256xbf16>, vector<8x256xf32> -> vector<8x256xf32>
      %45 = arith.addf %42, %44 : vector<8x256xf32>
      %46 = math.tanh %45 : vector<8x256xf32>
      %47 = arith.index_cast %40 : i32 to index
      %c0_32 = arith.constant 0 : index
      %48 = vector.load %arg10[%47, %c0_32] : memref<64x256xf32, #tpu.memory_space<vmem>>, vector<8x256xf32>
      tpu.vector_store %arg10[%47, %c0_32], %46 {strides = array<i32>} : memref<64x256xf32, #tpu.memory_space<vmem>>, vector<8x256xf32>,
      %c3_i32 = arith.constant 3 : i32
      %c8_i32_33 = arith.constant 8 : i32
      %49 = arith.muli %c3_i32, %c8_i32_33 : i32
      %50 = tpu.assume_multiple %49, 8 : i32
      %51 = arith.index_cast %50 : i32 to index
      %c0_34 = arith.constant 0 : index
      %52 = vector.load %arg10[%51, %c0_34] : memref<64x256xf32, #tpu.memory_space<vmem>>, vector<8x256xf32>
      %53 = arith.truncf %46 : vector<8x256xf32> to vector<8x256xbf16>
      %cst_35 = arith.constant dense<0.000000e+00> : vector<8x256xf32>
      %54 = tpu.matmul %53, %17, %cst_35 {dimension_numbers = #tpu.dot_dimension_numbers<[1], [0], [0], [1], [0, 0, 1, 1], [], []>} : vector<8x256xbf16>, vector<256x256xbf16>, vector<8x256xf32> -> vector<8x256xf32>
      %55 = arith.addf %52, %54 : vector<8x256xf32>
      %56 = math.tanh %55 : vector<8x256xf32>
      %57 = arith.index_cast %50 : i32 to index
      %c0_36 = arith.constant 0 : index
      %58 = vector.load %arg10[%57, %c0_36] : memref<64x256xf32, #tpu.memory_space<vmem>>, vector<8x256xf32>
      tpu.vector_store %arg10[%57, %c0_36], %56 {strides = array<i32>} : memref<64x256xf32, #tpu.memory_space<vmem>>, vector<8x256xf32>,
      %c4_i32 = arith.constant 4 : i32
      %c8_i32_37 = arith.constant 8 : i32
      %59 = arith.muli %c4_i32, %c8_i32_37 : i32
      %60 = tpu.assume_multiple %59, 8 : i32
      %61 = arith.index_cast %60 : i32 to index
      %c0_38 = arith.constant 0 : index
      %62 = vector.load %arg10[%61, %c0_38] : memref<64x256xf32, #tpu.memory_space<vmem>>, vector<8x256xf32>
      %63 = arith.truncf %56 : vector<8x256xf32> to vector<8x256xbf16>
      %cst_39 = arith.constant dense<0.000000e+00> : vector<8x256xf32>
      %64 = tpu.matmul %63, %17, %cst_39 {dimension_numbers = #tpu.dot_dimension_numbers<[1], [0], [0], [1], [0, 0, 1, 1], [], []>} : vector<8x256xbf16>, vector<256x256xbf16>, vector<8x256xf32> -> vector<8x256xf32>
      %65 = arith.addf %62, %64 : vector<8x256xf32>
      %66 = math.tanh %65 : vector<8x256xf32>
      %67 = arith.index_cast %60 : i32 to index
      %c0_40 = arith.constant 0 : index
      %68 = vector.load %arg10[%67, %c0_40] : memref<64x256xf32, #tpu.memory_space<vmem>>, vector<8x256xf32>
      tpu.vector_store %arg10[%67, %c0_40], %66 {strides = array<i32>} : memref<64x256xf32, #tpu.memory_space<vmem>>, vector<8x256xf32>,
      %c5_i32 = arith.constant 5 : i32
      %c8_i32_41 = arith.constant 8 : i32
      %69 = arith.muli %c5_i32, %c8_i32_41 : i32
      %70 = tpu.assume_multiple %69, 8 : i32
      %71 = arith.index_cast %70 : i32 to index
      %c0_42 = arith.constant 0 : index
      %72 = vector.load %arg10[%71, %c0_42] : memref<64x256xf32, #tpu.memory_space<vmem>>, vector<8x256xf32>
      %73 = arith.truncf %66 : vector<8x256xf32> to vector<8x256xbf16>
      %cst_43 = arith.constant dense<0.000000e+00> : vector<8x256xf32>
      %74 = tpu.matmul %73, %17, %cst_43 {dimension_numbers = #tpu.dot_dimension_numbers<[1], [0], [0], [1], [0, 0, 1, 1], [], []>} : vector<8x256xbf16>, vector<256x256xbf16>, vector<8x256xf32> -> vector<8x256xf32>
      %75 = arith.addf %72, %74 : vector<8x256xf32>
      %76 = math.tanh %75 : vector<8x256xf32>
      %77 = arith.index_cast %70 : i32 to index
      %c0_44 = arith.constant 0 : index
      %78 = vector.load %arg10[%77, %c0_44] : memref<64x256xf32, #tpu.memory_space<vmem>>, vector<8x256xf32>
      tpu.vector_store %arg10[%77, %c0_44], %76 {strides = array<i32>} : memref<64x256xf32, #tpu.memory_space<vmem>>, vector<8x256xf32>,
      %c6_i32 = arith.constant 6 : i32
      %c8_i32_45 = arith.constant 8 : i32
      %79 = arith.muli %c6_i32, %c8_i32_45 : i32
      %80 = tpu.assume_multiple %79, 8 : i32
      %81 = arith.index_cast %80 : i32 to index
      %c0_46 = arith.constant 0 : index
      %82 = vector.load %arg10[%81, %c0_46] : memref<64x256xf32, #tpu.memory_space<vmem>>, vector<8x256xf32>
      %83 = arith.truncf %76 : vector<8x256xf32> to vector<8x256xbf16>
      %cst_47 = arith.constant dense<0.000000e+00> : vector<8x256xf32>
      %84 = tpu.matmul %83, %17, %cst_47 {dimension_numbers = #tpu.dot_dimension_numbers<[1], [0], [0], [1], [0, 0, 1, 1], [], []>} : vector<8x256xbf16>, vector<256x256xbf16>, vector<8x256xf32> -> vector<8x256xf32>
      %85 = arith.addf %82, %84 : vector<8x256xf32>
      %86 = math.tanh %85 : vector<8x256xf32>
      %87 = arith.index_cast %80 : i32 to index
      %c0_48 = arith.constant 0 : index
      %88 = vector.load %arg10[%87, %c0_48] : memref<64x256xf32, #tpu.memory_space<vmem>>, vector<8x256xf32>
      tpu.vector_store %arg10[%87, %c0_48], %86 {strides = array<i32>} : memref<64x256xf32, #tpu.memory_space<vmem>>, vector<8x256xf32>,
      %c7_i32 = arith.constant 7 : i32
      %c8_i32_49 = arith.constant 8 : i32
      %89 = arith.muli %c7_i32, %c8_i32_49 : i32
      %90 = tpu.assume_multiple %89, 8 : i32
      %91 = arith.index_cast %90 : i32 to index
      %c0_50 = arith.constant 0 : index
      %92 = vector.load %arg10[%91, %c0_50] : memref<64x256xf32, #tpu.memory_space<vmem>>, vector<8x256xf32>
      %93 = arith.truncf %86 : vector<8x256xf32> to vector<8x256xbf16>
      %cst_51 = arith.constant dense<0.000000e+00> : vector<8x256xf32>
      %94 = tpu.matmul %93, %17, %cst_51 {dimension_numbers = #tpu.dot_dimension_numbers<[1], [0], [0], [1], [0, 0, 1, 1], [], []>} : vector<8x256xbf16>, vector<256x256xbf16>, vector<8x256xf32> -> vector<8x256xf32>
      %95 = arith.addf %92, %94 : vector<8x256xf32>
      %96 = math.tanh %95 : vector<8x256xf32>
      %97 = arith.index_cast %90 : i32 to index
      %c0_52 = arith.constant 0 : index
      %98 = vector.load %arg10[%97, %c0_52] : memref<64x256xf32, #tpu.memory_space<vmem>>, vector<8x256xf32>
      tpu.vector_store %arg10[%97, %c0_52], %96 {strides = array<i32>} : memref<64x256xf32, #tpu.memory_space<vmem>>, vector<8x256xf32>,
      %c8_i32_53 = arith.constant 8 : i32
      %c0_54 = arith.constant 0 : index
      %c0_55 = arith.constant 0 : index
      %99 = vector.load %arg9[%c0_54, %c0_55] : memref<8x256xf32, #tpu.memory_space<vmem>>, vector<8x256xf32>
      tpu.vector_store %arg9[%c0_54, %c0_55], %96 {strides = array<i32>} : memref<8x256xf32, #tpu.memory_space<vmem>>, vector<8x256xf32>,
      %c0_56 = arith.constant 0 : index
      %c0_57 = arith.constant 0 : index
      %100 = vector.load %arg10[%c0_56, %c0_57] : memref<64x256xf32, #tpu.memory_space<vmem>>, vector<64x256xf32>
      %101 = arith.truncf %100 : vector<64x256xf32> to vector<64x256xbf16>
      %c0_58 = arith.constant 0 : index
      %c0_59 = arith.constant 0 : index
      %102 = vector.load %arg11[%c0_58, %c0_59] : memref<64x256xbf16, #tpu.memory_space<vmem>>, vector<64x256xbf16>
      tpu.vector_store %arg11[%c0_58, %c0_59], %101 {strides = array<i32>} : memref<64x256xbf16, #tpu.memory_space<vmem>>, vector<64x256xbf16>,
    } else {
    }
    %c0 = arith.constant 0 : index
    %c0_1 = arith.constant 0 : index
    %3 = vector.load %arg11[%c0, %c0_1] : memref<64x256xbf16, #tpu.memory_space<vmem>>, vector<64x256xbf16>
    %c0_2 = arith.constant 0 : index
    %c0_3 = arith.constant 0 : index
    %4 = vector.load %arg6[%c0_2, %c0_3] : memref<256x256xbf16, #tpu.memory_space<vmem>>, vector<256x256xbf16>
    %cst = arith.constant dense<0.000000e+00> : vector<64x256xf32>
    %5 = tpu.matmul %3, %4, %cst {dimension_numbers = #tpu.dot_dimension_numbers<[1], [0], [0], [1], [0, 0, 1, 1], [], []>} : vector<64x256xbf16>, vector<256x256xbf16>, vector<64x256xf32> -> vector<64x256xf32>
    %c0_4 = arith.constant 0 : index
    %c0_5 = arith.constant 0 : index
    %6 = vector.load %arg7[%c0_4, %c0_5] : memref<1x256xf32, #tpu.memory_space<vmem>>, vector<1x256xf32>
    %7 = vector.broadcast %6 : vector<1x256xf32> to vector<64x256xf32>
    %8 = arith.addf %5, %7 : vector<64x256xf32>
    %c0_6 = arith.constant 0 : index
    %c0_7 = arith.constant 0 : index
    %9 = vector.load %arg8[%c0_6, %c0_7] : memref<64x256xf32, #tpu.memory_space<vmem>>, vector<64x256xf32>
    tpu.vector_store %arg8[%c0_6, %c0_7], %8 {strides = array<i32>} : memref<64x256xf32, #tpu.memory_space<vmem>>, vector<64x256xf32>,
    return
  }
  func.func @transform_0(%arg0: i32) -> (i32, i32) {
    %c0_i32 = arith.constant 0 : i32
    %c0_i32_0 = arith.constant 0 : i32
    %c0_i32_1 = arith.constant 0 : i32
    return %c0_i32, %c0_i32_0 : i32, i32
  }
  func.func @transform_1(%arg0: i32) -> (i32, i32) {
    %c0_i32 = arith.constant 0 : i32
    %c0_i32_0 = arith.constant 0 : i32
    %c0_i32_1 = arith.constant 0 : i32
    return %c0_i32, %c0_i32_0 : i32, i32
  }
  func.func @transform_2(%arg0: i32) -> (i32, i32) {
    %c0_i32 = arith.constant 0 : i32
    %c0_i32_0 = arith.constant 0 : i32
    %c0_i32_1 = arith.constant 0 : i32
    return %c0_i32, %c0_i32_0 : i32, i32
  }
  func.func @transform_3(%arg0: i32) -> (i32, i32) {
    %c0_i32 = arith.constant 0 : i32
    %c0_i32_0 = arith.constant 0 : i32
    %c0_i32_1 = arith.constant 0 : i32
    return %c0_i32, %c0_i32_0 : i32, i32
  }
  func.func @transform_4(%arg0: i32) -> (i32, i32) {
    %c0_i32 = arith.constant 0 : i32
    %c0_i32_0 = arith.constant 0 : i32
    %c0_i32_1 = arith.constant 0 : i32
    return %c0_i32, %c0_i32_0 : i32, i32
  }
  func.func @transform_5(%arg0: i32) -> (i32, i32) {
    %c0_i32 = arith.constant 0 : i32
    %c0_i32_0 = arith.constant 0 : i32
    return %c0_i32, %arg0 : i32, i32
  }
  func.func @transform_6(%arg0: i32) -> (i32, i32) {
    %c0_i32 = arith.constant 0 : i32
    %c0_i32_0 = arith.constant 0 : i32
    return %c0_i32, %arg0 : i32, i32
  }
  func.func @transform_7(%arg0: i32) -> (i32, i32) {
    %c0_i32 = arith.constant 0 : i32
    %c0_i32_0 = arith.constant 0 : i32
    return %c0_i32, %arg0 : i32, i32
  }
  func.func @transform_8(%arg0: i32) -> (i32, i32) {
    %c0_i32 = arith.constant 0 : i32
    %c0_i32_0 = arith.constant 0 : i32
    %c0_i32_1 = arith.constant 0 : i32
    return %c0_i32, %c0_i32_0 : i32, i32
  }
}

</mosaic_0001>

<bundles_post_ra>
// kernel: tpu_custom_call.1
= control target key start
LH: loop header
LB: loop body
LE: loop exit
PB: predicated region body
PF: predicated region fallthrough
CT: control target
= control target key end

     0   :  { %14 = vsyncpa [#allocation5], 0  ;;  %s2385_s0 = inlined_call_operand.hbm [shape: bf16[64,128], index: 0, kind: input, shape index: {}]   ;;  %s2386_s1 = inlined_call_operand.hbm [shape: f32[8,256], index: 1, kind: input, shape index: {}]   ;;  %s2387_s2 = inlined_call_operand.hbm [shape: bf16[128,256], index: 2, kind: input, shape index: {}]   ;;  %s2388_s3 = inlined_call_operand.hbm [shape: bf16[256,256], index: 3, kind: input, shape index: {}]   ;;  %s2389_s4 = inlined_call_operand.vmem [shape: f32[1,256], index: 4, kind: input, shape index: {}]   ;;  %s2390_s5 = inlined_call_operand.hbm [shape: bf16[256,256], index: 5, kind: input, shape index: {}]   ;;  %s2391_s6 = inlined_call_operand.vmem [shape: f32[1,256], index: 6, kind: input, shape index: {}]   ;;  %s2392_s7 = inlined_call_operand.hbm [shape: f32[64,256], index: 7, kind: output, shape index: {0}]   ;;  %s2393_s8 = inlined_call_operand.hbm [shape: f32[8,256], index: 8, kind: output, shape index: {1}]  }
   0x1   :  { %15 = vsyncpa [#allocation8], 0 }
   0x2   :  { %16 = vsyncpa [#allocation11], 0 }
   0x3   :  { %17 = vsyncpa [#allocation6], 0 }
   0x4   :  { %18 = vsyncpa [#allocation15], 0  ;;  %s1749_s27 = smov [#allocation7]   ;;  %s1585_s9 = scalar_lea.hbm %s2386_s1, 256 }
   0x5   :  { %s37_s28 = sshll.u32 %s1749_s27, 4  ;;  %p1586_p0 = scmp.ne.s32.totalorder %s2386_s1, %s1585_s9  ;;  %s38_s28 = int_to_ptr.vmem [resolvable:$true] %s37_s28 }
   0x6   :  { %p1589_p1 = scmp.lt.u32.totalorder %s1585_s9, %s2386_s1 }
   0x8   :  { %p1591_p2 = pnand %p1589_p1, %p1586_p0 }
   0xa   :  { %1594 = shalt.err (!%p1591_p2)
}
   0xb   :  { %s1595_s14 = scalar_lea.vmem %s38_s28, 256  ;;  %p1600_p4 = scmp.lt.s32.totalorder %s38_s28, %s38_s28 }
   0xc   :  { %p1596_p3 = scmp.ne.s32.totalorder %s38_s28, %s1595_s14  ;;  %p1601_p5 = scmp.lt.s32.totalorder %s1595_s14, %s1595_s14 }
   0xe   :  { %p1602_p6 = por %p1601_p5, %p1600_p4 }
  0x10   :  { %p1603_p7 = pnand %p1602_p6, %p1596_p3 }
  0x12   :  { %1606 = shalt.err (!%p1603_p7)
}
  0x13   :  { %40 = dma.hbm_to_vmem [thread:$0]  %s2386_s1, 256, %s38_s28, [#allocation8]  }
  0x14   :  { %s1750_s17 = smov [#allocation10]   ;;  %s1751_s19 = smov [#allocation4]  }
  0x15   :  { %s58_s18 = sshll.u32 %s1750_s17, 4  ;;  %s24_s20 = sshll.u32 %s1751_s19, 4  ;;  %s59_s18 = int_to_ptr.vmem [resolvable:$true] %s58_s18  ;;  %s25_s20 = int_to_ptr.vmem [resolvable:$true] %s24_s20 }
  0x16   :  { %s1607_s23 = scalar_lea.hbm %s2388_s3, 4096 }
  0x17   :  { %p1608_p8 = scmp.ne.s32.totalorder %s2388_s3, %s1607_s23  ;;  %p1611_p9 = scmp.lt.u32.totalorder %s1607_s23, %s2388_s3 }
  0x19   :  { %p1613_p10 = pnand %p1611_p9, %p1608_p8 }
  0x1b   :  { %1616 = shalt.err (!%p1613_p10)
}
  0x1c   :  { %s1617_s1 = scalar_lea.vmem %s59_s18, 4096  ;;  %p1622_p12 = scmp.lt.s32.totalorder %s59_s18, %s59_s18 }
  0x1d   :  { %p1618_p11 = scmp.ne.s32.totalorder %s59_s18, %s1617_s1  ;;  %p1623_p13 = scmp.lt.s32.totalorder %s1617_s1, %s1617_s1 }
  0x1f   :  { %p1624_p0 = por %p1623_p13, %p1622_p12 }
  0x21   :  { %p1625_p1 = pnand %p1624_p0, %p1618_p11 }
  0x23   :  { %1628 = shalt.err (!%p1625_p1)
}
  0x24   :  { %s1752_s28 = smov 128   ;;  %s1753_s29 = smov 8  }
  0x25   :  { %64 = dma.hbm_to_vmem [thread:$0]  %s2388_s3, 4096, %s59_s18, [#allocation11], %s1752_s28, %s1752_s28, %s1753_s29  }
  0x26   :  { %s1629_s12 = scalar_lea.hbm %s2385_s0, 512 }
  0x27   :  { %p1630_p2 = scmp.ne.s32.totalorder %s2385_s0, %s1629_s12  ;;  %p1633_p3 = scmp.lt.u32.totalorder %s1629_s12, %s2385_s0 }
  0x29   :  { %p1635_p4 = pnand %p1633_p3, %p1630_p2 }
  0x2b   :  { %1638 = shalt.err (!%p1635_p4)
}
  0x2c   :  { %s1639_s17 = scalar_lea.vmem %s25_s20, 512  ;;  %p1644_p6 = scmp.lt.s32.totalorder %s25_s20, %s25_s20 }
  0x2d   :  { %p1640_p5 = scmp.ne.s32.totalorder %s25_s20, %s1639_s17  ;;  %p1645_p7 = scmp.lt.s32.totalorder %s1639_s17, %s1639_s17 }
  0x2f   :  { %p1646_p8 = por %p1645_p7, %p1644_p6 }
  0x31   :  { %p1647_p9 = pnand %p1646_p8, %p1640_p5 }
  0x33   :  { %1650 = shalt.err (!%p1647_p9)
}
  0x34   :  { %s1754_s3 = smov 64   ;;  %s1755_s18 = smov 4  }
  0x35   :  { %30 = dma.hbm_to_vmem [thread:$0]  %s2385_s0, 512, %s25_s20, [#allocation5], %s1754_s3, %s1754_s3, %s1755_s18  }
  0x36   :  { %s1756_s22 = smov [#allocation9]   ;;  %s1757_s24 = smov [#allocation12]  }
  0x37   :  { %s46_s23 = sshll.u32 %s1756_s22, 4  ;;  %s72_s25 = sshll.u32 %s1757_s24, 4  ;;  %s47_s23 = int_to_ptr.vmem [resolvable:$true] %s46_s23  ;;  %s73_s25 = int_to_ptr.vmem [resolvable:$true] %s72_s25 }
  0x38   :  { %s1651_s1 = scalar_lea.hbm %s2387_s2, 2048 }
  0x39   :  { %p1652_p10 = scmp.ne.s32.totalorder %s2387_s2, %s1651_s1  ;;  %p1655_p11 = scmp.lt.u32.totalorder %s1651_s1, %s2387_s2 }
  0x3b   :  { %p1657_p12 = pnand %p1655_p11, %p1652_p10 }
  0x3d   :  { %1660 = shalt.err (!%p1657_p12)
}
  0x3e   :  { %s1661_s0 = scalar_lea.vmem %s47_s23, 2048  ;;  %p1666_p0 = scmp.lt.s32.totalorder %s47_s23, %s47_s23 }
  0x3f   :  { %p1662_p13 = scmp.ne.s32.totalorder %s47_s23, %s1661_s0  ;;  %p1667_p1 = scmp.lt.s32.totalorder %s1661_s0, %s1661_s0 }
  0x41   :  { %p1668_p2 = por %p1667_p1, %p1666_p0 }
  0x43   :  { %p1669_p3 = pnand %p1668_p2, %p1662_p13 }
  0x45   :  { %1672 = shalt.err (!%p1669_p3)
}
  0x46   :  { %52 = dma.hbm_to_vmem [thread:$0]  %s2387_s2, 2048, %s47_s23, [#allocation8], %s1752_s28, %s1752_s28, %s1753_s29  }
  0x47   :  { %s1673_s15 = scalar_lea.hbm %s2390_s5, 4096 }
  0x48   :  { %p1674_p4 = scmp.ne.s32.totalorder %s2390_s5, %s1673_s15  ;;  %p1677_p5 = scmp.lt.u32.totalorder %s1673_s15, %s2390_s5 }
  0x4a   :  { %p1679_p6 = pnand %p1677_p5, %p1674_p4 }
  0x4c   :  { %1682 = shalt.err (!%p1679_p6)
}
  0x4d   :  { %s1683_s19 = scalar_lea.vmem %s73_s25, 4096  ;;  %p1688_p8 = scmp.lt.s32.totalorder %s73_s25, %s73_s25 }
  0x4e   :  { %p1684_p7 = scmp.ne.s32.totalorder %s73_s25, %s1683_s19  ;;  %p1689_p9 = scmp.lt.s32.totalorder %s1683_s19, %s1683_s19 }
  0x50   :  { %p1690_p10 = por %p1689_p9, %p1688_p8 }
  0x52   :  { %p1691_p11 = pnand %p1690_p10, %p1684_p7 }
  0x54   :  { %1694 = shalt.err (!%p1691_p11)
}
  0x55   :  { %78 = dma.hbm_to_vmem [thread:$0]  %s2390_s5, 4096, %s73_s25, [#allocation11], %s1752_s28, %s1752_s28, %s1753_s29  }
  0x56   :  { %1739 = dma.done.wait [#allocation5], 512  }
  0x57   :  { %1740 = vsyncadd [#allocation5], 4294966784 }
  0x58   :  { %1741 = dma.done.wait [#allocation8], 2304  }
  0x59   :  { %1742 = vsyncadd [#allocation8], 4294964992 }
  0x5a   :  { %1743 = dma.done.wait [#allocation11], 8192  }
  0x5b   :  { %1744 = vsyncadd [#allocation11], 4294959104  ;;  %v1758_v0 = vmov 0   ;;  %v1878_v1 = vld [vmem:[#allocation10 + $0x4] ss:$8 sps:$4 sm:$0xff]   ;;  %v363_v35 = vld [vmem:[#allocation7 + $0x8] sm:$0xff]  ;;  %v127_v60 = vlaneseq }
  0x5c   :  { %273 = vmatprep.mubr.bf16.mxu0 %v1758_v0  ;;  %v1880_v2 = vld [vmem:[#allocation10] ss:$8 sps:$4 sm:$0xff]   ;;  %531 = vmatprep.subr.bf16.mxu1 %v1878_v1  ;;  %v1883_v3 = vld [vmem:[#allocation10 + $0x14] ss:$8 sps:$4 sm:$0xff]   ;;  %v1886_v4 = vld [vmem:[#allocation10 + $0x10] ss:$8 sps:$4 sm:$0xff]   ;;  %v370_v38 = vpack.c.bf16 %v363_v35, %v363_v35 }
  0x5d   :  { %532 = vmatpush1.bf16.msra.mxu1 %v1880_v2  ;;  %v1889_v5 = vld [vmem:[#allocation10 + $0x24] ss:$8 sps:$4 sm:$0xff]   ;;  %v1892_v6 = vld [vmem:[#allocation10 + $0x20] ss:$8 sps:$4 sm:$0xff]   ;;  %v1895_v7 = vld [vmem:[#allocation10 + $0x34] ss:$8 sps:$4 sm:$0xff]  }
  0x5e   :  { %533 = vmatprep.subr.bf16.mxu1 %v1883_v3  ;;  %v1450_v8 = vld [vmem:[#allocation9 + $0x4] ss:$8 sps:$4 sm:$0xff]   ;;  %v1452_v9 = vld [vmem:[#allocation9] ss:$8 sps:$4 sm:$0xff]   ;;  %v1898_v10 = vld [vmem:[#allocation10 + $0x30] ss:$8 sps:$4 sm:$0xff]   ;;  %563 = vmatprep.mubr.bf16.mxu1 %v370_v38 }
  0x5f   :  { %v1900_v11 = vld [vmem:[#allocation10 + $0x44] ss:$8 sps:$4 sm:$0xff]   ;;  %241 = vmatprep.subr.bf16.mxu0 %v1450_v8  ;;  %v1456_v12 = vld [vmem:[#allocation9 + $0x14] ss:$8 sps:$4 sm:$0xff]   ;;  %v1458_v13 = vld [vmem:[#allocation9 + $0x10] ss:$8 sps:$4 sm:$0xff]  }
  0x60   :  { %242 = vmatpush1.bf16.msra.mxu0 %v1452_v9  ;;  %v1904_v14 = vld [vmem:[#allocation10 + $0x40] ss:$8 sps:$4 sm:$0xff]   ;;  %v1462_v15 = vld [vmem:[#allocation9 + $0x24] ss:$8 sps:$4 sm:$0xff]   ;;  %v1907_v16 = vld [vmem:[#allocation10 + $0x54] ss:$8 sps:$4 sm:$0xff]  }
  0x61   :  { %534 = vmatpush1.bf16.msra.mxu1 %v1886_v4  ;;  %243 = vmatprep.subr.bf16.mxu0 %v1456_v12  ;;  %v1464_v17 = vld [vmem:[#allocation9 + $0x20] ss:$8 sps:$4 sm:$0xff]   ;;  %v1468_v18 = vld [vmem:[#allocation9 + $0x34] ss:$8 sps:$4 sm:$0xff]   ;;  %v1910_v19 = vld [vmem:[#allocation10 + $0x50] ss:$8 sps:$4 sm:$0xff]  }
  0x62   :  { %535 = vmatprep.subr.bf16.mxu1 %v1889_v5  ;;  %v1913_v20 = vld [vmem:[#allocation10 + $0x64] ss:$8 sps:$4 sm:$0xff]   ;;  %v1470_v21 = vld [vmem:[#allocation9 + $0x30] ss:$8 sps:$4 sm:$0xff]   ;;  %v1916_v23 = vld [vmem:[#allocation10 + $0x60] ss:$8 sps:$4 sm:$0xff]  }
  0x63   :  { %v1474_v22 = vld [vmem:[#allocation9 + $0x44] ss:$8 sps:$4 sm:$0xff]   ;;  %v1919_v24 = vld [vmem:[#allocation10 + $0x74] ss:$8 sps:$4 sm:$0xff]   ;;  %v1476_v25 = vld [vmem:[#allocation9 + $0x40] ss:$8 sps:$4 sm:$0xff]  }
  0x64   :  { %244 = vmatpush1.bf16.msra.mxu0 %v1458_v13  ;;  %v1480_v26 = vld [vmem:[#allocation9 + $0x54] ss:$8 sps:$4 sm:$0xff]   ;;  %v1922_v27 = vld [vmem:[#allocation10 + $0x70] ss:$8 sps:$4 sm:$0xff]   ;;  %v1925_v28 = vld [vmem:[#allocation10 + $0x84] ss:$8 sps:$4 sm:$0xff]  }
  0x65   :  { %536 = vmatpush1.bf16.msra.mxu1 %v1892_v6  ;;  %245 = vmatprep.subr.bf16.mxu0 %v1462_v15  ;;  %v1482_v29 = vld [vmem:[#allocation9 + $0x50] ss:$8 sps:$4 sm:$0xff]   ;;  %v1486_v30 = vld [vmem:[#allocation9 + $0x64] ss:$8 sps:$4 sm:$0xff]   ;;  %v1928_v31 = vld [vmem:[#allocation10 + $0x80] ss:$8 sps:$4 sm:$0xff]  }
  0x66   :  { %537 = vmatprep.subr.bf16.mxu1 %v1895_v7  ;;  %v1931_v32 = vld [vmem:[#allocation10 + $0x94] ss:$8 sps:$4 sm:$0xff]   ;;  %v1933_v33 = vld [vmem:[#allocation10 + $0x90] ss:$8 sps:$4 sm:$0xff]   ;;  %v1488_v34 = vld [vmem:[#allocation9 + $0x60] ss:$8 sps:$4 sm:$0xff]  }
  0x67   :  { %v1935_v36 = vld [vmem:[#allocation10 + $0xa4] ss:$8 sps:$4 sm:$0xff]   ;;  %v1492_v37 = vld [vmem:[#allocation9 + $0x74] ss:$8 sps:$4 sm:$0xff]   ;;  %v1494_v39 = vld [vmem:[#allocation9 + $0x70] ss:$8 sps:$4 sm:$0xff]  }
  0x68   :  { %246 = vmatpush1.bf16.msra.mxu0 %v1464_v17  ;;  %v1939_v40 = vld [vmem:[#allocation10 + $0xa0] ss:$8 sps:$4 sm:$0xff]   ;;  %v1941_v41 = vld [vmem:[#allocation10 + $0xb4] ss:$8 sps:$4 sm:$0xff]   ;;  %v1945_v43 = vld [vmem:[#allocation10 + $0xb0] ss:$8 sps:$4 sm:$0xff]  }
  0x69   :  { %538 = vmatpush1.bf16.msra.mxu1 %v1898_v10  ;;  %247 = vmatprep.subr.bf16.mxu0 %v1468_v18  ;;  %v1498_v42 = vld [vmem:[#allocation4] sm:$0xff]   ;;  %v1947_v44 = vld [vmem:[#allocation10 + $0xc4] ss:$8 sps:$4 sm:$0xff]   ;;  %v1956_v45 = vld [vmem:[#allocation10 + $0xc0] ss:$8 sps:$4 sm:$0xff]   ;;  %v2047_v62 = vshrl.u32 %v127_v60, 7 }
  0x6a   :  { %539 = vmatprep.subr.bf16.mxu1 %v1900_v11  ;;  %v1959_v46 = vld [vmem:[#allocation10 + $0xd4] ss:$8 sps:$4 sm:$0xff]   ;;  %v1964_v48 = vld [vmem:[#allocation10 + $0xd0] ss:$8 sps:$4 sm:$0xff]   ;;  %v1967_v49 = vld [vmem:[#allocation10 + $0xe4] ss:$8 sps:$4 sm:$0xff]  }
  0x6b   :  { %v1502_v47 = vld [vmem:[#allocation4 + $0x8] sm:$0xff]   ;;  %v1973_v50 = vld [vmem:[#allocation10 + $0xe0] ss:$8 sps:$4 sm:$0xff]   ;;  %v362_v53 = vld [vmem:[#allocation7] sm:$0xff]  ;;  %v129_v12 = vsub.s32 0, %v2047_v62  ;;  %v133_v15 = vsub.s32 1, %v2047_v62 }
  0x6c   :  { %248 = vmatpush1.bf16.msra.mxu0 %v1470_v21  ;;  %v1976_v51 = vld [vmem:[#allocation10 + $0xf4] ss:$8 sps:$4 sm:$0xff]   ;;  %v1981_v52 = vld [vmem:[#allocation10 + $0xf0] ss:$8 sps:$4 sm:$0xff]   ;;  %v369_v54 = vpack.c.bf16 %v362_v53, %v362_v53  ;;  %v1503_v55 = vld [vmem:[#allocation4 + $0x10] sm:$0xff]  }
  0x6d   :  { %540 = vmatpush1.bf16.msra.mxu1 %v1904_v14  ;;  %249 = vmatprep.subr.bf16.mxu0 %v1474_v22  ;;  %v1504_v56 = vld [vmem:[#allocation4 + $0x18] sm:$0xff]   ;;  %v125_v13 = vld [vmem:[%s2389_s4] sm:$0x3] }
  0x6e   :  { %541 = vmatprep.subr.bf16.mxu1 %v1907_v16  ;;  %v2064_v17 = vrot.slane %v125_v13, %v129_v12  ;;  %v2068_v18 = vrot.slane %v125_v13, %v133_v15 }
  0x70   :  { %250 = vmatpush1.bf16.msra.mxu0 %v1476_v25 }
  0x71   :  { %542 = vmatpush1.bf16.msra.mxu1 %v1910_v19  ;;  %251 = vmatprep.subr.bf16.mxu0 %v1480_v26 }
  0x72   :  { %543 = vmatprep.subr.bf16.mxu1 %v1913_v20 }
  0x74   :  { %252 = vmatpush1.bf16.msra.mxu0 %v1482_v29 }
  0x75   :  { %544 = vmatpush1.bf16.msra.mxu1 %v1916_v23  ;;  %253 = vmatprep.subr.bf16.mxu0 %v1486_v30 }
  0x76   :  { %545 = vmatprep.subr.bf16.mxu1 %v1919_v24 }
  0x78   :  { %254 = vmatpush1.bf16.msra.mxu0 %v1488_v34 }
  0x79   :  { %546 = vmatpush1.bf16.msra.mxu1 %v1922_v27  ;;  %255 = vmatprep.subr.bf16.mxu0 %v1492_v37 }
  0x7a   :  { %547 = vmatprep.subr.bf16.mxu1 %v1925_v28 }
  0x7c   :  { %256 = vmatpush1.bf16.msra.mxu0 %v1494_v39 }
  0x7d   :  { %548 = vmatpush1.bf16.msra.mxu1 %v1928_v31  ;;  %585 = vmatprep.subr.bf16.mxu0 %v1878_v1 }
  0x7e   :  { %549 = vmatprep.subr.bf16.mxu1 %v1931_v32 }
  0x7f   :  { %274 = vmatmul.mubr.bf16.vlgmr.msra.gmra.mrb[0].mxu0 %v1498_v42 }
  0x80   :  { %586 = vmatpush1.bf16.msra.mxu0 %v1880_v2  ;;  %283 = vmatprep.mubr.bf16.mxu0 %v1758_v0 }
  0x81   :  { %550 = vmatpush1.bf16.msra.mxu1 %v1933_v33  ;;  %587 = vmatprep.subr.bf16.mxu0 %v1883_v3 }
  0x82   :  { %551 = vmatprep.subr.bf16.mxu1 %v1935_v36 }
  0x84   :  { %588 = vmatpush1.bf16.msra.mxu0 %v1886_v4 }
  0x85   :  { %552 = vmatpush1.bf16.msra.mxu1 %v1939_v40  ;;  %589 = vmatprep.subr.bf16.mxu0 %v1889_v5 }
  0x86   :  { %553 = vmatprep.subr.bf16.mxu1 %v1941_v41 }
  0x87   :  { %284 = vmatmul.mubr.bf16.gmra.mrb[4].mxu0 %v1502_v47 }
  0x88   :  { %590 = vmatpush1.bf16.msra.mxu0 %v1892_v6  ;;  %293 = vmatprep.mubr.bf16.mxu0 %v1758_v0 }
  0x89   :  { %554 = vmatpush1.bf16.msra.mxu1 %v1945_v43  ;;  %591 = vmatprep.subr.bf16.mxu0 %v1895_v7 }
  0x8a   :  { %555 = vmatprep.subr.bf16.mxu1 %v1947_v44 }
  0x8c   :  { %592 = vmatpush1.bf16.msra.mxu0 %v1898_v10 }
  0x8d   :  { %556 = vmatpush1.bf16.msra.mxu1 %v1956_v45  ;;  %593 = vmatprep.subr.bf16.mxu0 %v1900_v11 }
  0x8e   :  { %557 = vmatprep.subr.bf16.mxu1 %v1959_v46 }
  0x8f   :  { %294 = vmatmul.mubr.bf16.gmra.mrb[8].mxu0 %v1503_v55 }
  0x90   :  { %594 = vmatpush1.bf16.msra.mxu0 %v1904_v14  ;;  %303 = vmatprep.mubr.bf16.mxu0 %v1758_v0 }
  0x91   :  { %558 = vmatpush1.bf16.msra.mxu1 %v1964_v48  ;;  %595 = vmatprep.subr.bf16.mxu0 %v1907_v16 }
  0x92   :  { %559 = vmatprep.subr.bf16.mxu1 %v1967_v49 }
  0x94   :  { %596 = vmatpush1.bf16.msra.mxu0 %v1910_v19 }
  0x95   :  { %560 = vmatpush1.bf16.msra.mxu1 %v1973_v50  ;;  %597 = vmatprep.subr.bf16.mxu0 %v1913_v20 }
  0x96   :  { %561 = vmatprep.subr.bf16.mxu1 %v1976_v51 }
  0x97   :  { %304 = vmatmul.mubr.bf16.gmra.mrb[12].mxu0 %v1504_v56 }
  0x98   :  { %598 = vmatpush1.bf16.msra.mxu0 %v1916_v23 }
  0x99   :  { %562 = vmatpush1.bf16.msra.mxu1 %v1981_v52  ;;  %599 = vmatprep.subr.bf16.mxu0 %v1919_v24 }
  0x9a   :  { %639 = vmatprep.subr.bf16.mxu1 %v1878_v1 }
  0x9c   :  { %564 = vmatmul.mubr.bf16.vlgmr.msra.gmra.mrb[0].mxu1 %v369_v54  ;;  %600 = vmatpush1.bf16.msra.mxu0 %v1922_v27 }
  0x9d   :  { %640 = vmatpush1.bf16.msra.mxu1 %v1880_v2  ;;  %601 = vmatprep.subr.bf16.mxu0 %v1925_v28 }
  0x9e   :  { %641 = vmatprep.subr.bf16.mxu1 %v1883_v3 }
  0xa0   :  { %602 = vmatpush1.bf16.msra.mxu0 %v1928_v31 }
  0xa1   :  { %642 = vmatpush1.bf16.msra.mxu1 %v1886_v4  ;;  %603 = vmatprep.subr.bf16.mxu0 %v1931_v32 }
  0xa2   :  { %643 = vmatprep.subr.bf16.mxu1 %v1889_v5 }
  0xa4   :  { %604 = vmatpush1.bf16.msra.mxu0 %v1933_v33 }
  0xa5   :  { %644 = vmatpush1.bf16.msra.mxu1 %v1892_v6  ;;  %605 = vmatprep.subr.bf16.mxu0 %v1935_v36 }
  0xa6   :  { %645 = vmatprep.subr.bf16.mxu1 %v1895_v7 }
  0xa8   :  { %606 = vmatpush1.bf16.msra.mxu0 %v1939_v40 }
  0xa9   :  { %646 = vmatpush1.bf16.msra.mxu1 %v1898_v10  ;;  %607 = vmatprep.subr.bf16.mxu0 %v1941_v41 }
  0xaa   :  { %647 = vmatprep.subr.bf16.mxu1 %v1900_v11 }
  0xac   :  { %608 = vmatpush1.bf16.msra.mxu0 %v1945_v43 }
  0xad   :  { %648 = vmatpush1.bf16.msra.mxu1 %v1904_v14  ;;  %609 = vmatprep.subr.bf16.mxu0 %v1947_v44 }
  0xae   :  { %649 = vmatprep.subr.bf16.mxu1 %v1907_v16 }
  0xb0   :  { %610 = vmatpush1.bf16.msra.mxu0 %v1956_v45 }
  0xb1   :  { %650 = vmatpush1.bf16.msra.mxu1 %v1910_v19  ;;  %611 = vmatprep.subr.bf16.mxu0 %v1959_v46 }
  0xb2   :  { %651 = vmatprep.subr.bf16.mxu1 %v1913_v20 }
  0xb4   :  { %612 = vmatpush1.bf16.msra.mxu0 %v1964_v48 }
  0xb5   :  { %652 = vmatpush1.bf16.msra.mxu1 %v1916_v23  ;;  %613 = vmatprep.subr.bf16.mxu0 %v1967_v49 }
  0xb6   :  { %653 = vmatprep.subr.bf16.mxu1 %v1919_v24 }
  0xb8   :  { %614 = vmatpush1.bf16.msra.mxu0 %v1973_v50 }
  0xb9   :  { %654 = vmatpush1.bf16.msra.mxu1 %v1922_v27  ;;  %615 = vmatprep.subr.bf16.mxu0 %v1976_v51 }
  0xba   :  { %655 = vmatprep.subr.bf16.mxu1 %v1925_v28 }
  0xbc   :  { %616 = vmatpush1.bf16.msra.mxu0 %v1981_v52 }
  0xbd   :  { %656 = vmatpush1.bf16.msra.mxu1 %v1928_v31  ;;  %693 = vmatprep.subr.bf16.mxu0 %v1878_v1 }
  0xbe   :  { %657 = vmatprep.subr.bf16.mxu1 %v1931_v32 }
  0xc1   :  { %658 = vmatpush1.bf16.msra.mxu1 %v1933_v33 }
  0xc2   :  { %659 = vmatprep.subr.bf16.mxu1 %v1935_v36 }
  0xc5   :  { %660 = vmatpush1.bf16.msra.mxu1 %v1939_v40 }
  0xc6   :  { %661 = vmatprep.subr.bf16.mxu1 %v1941_v41 }
  0xc9   :  { %662 = vmatpush1.bf16.msra.mxu1 %v1945_v43 }
  0xca   :  { %663 = vmatprep.subr.bf16.mxu1 %v1947_v44 }
  0xcd   :  { %664 = vmatpush1.bf16.msra.mxu1 %v1956_v45 }
  0xce   :  { %665 = vmatprep.subr.bf16.mxu1 %v1959_v46 }
  0xd1   :  { %666 = vmatpush1.bf16.msra.mxu1 %v1964_v48 }
  0xd2   :  { %667 = vmatprep.subr.bf16.mxu1 %v1967_v49 }
  0xd5   :  { %668 = vmatpush1.bf16.msra.mxu1 %v1973_v50 }
  0xd6   :  { %669 = vmatprep.subr.bf16.mxu1 %v1976_v51 }
  0xd9   :  { %670 = vmatpush1.bf16.msra.mxu1 %v1981_v52 }
  0xda   :  { %747 = vmatprep.subr.bf16.mxu1 %v1878_v1 }
 0x152   :  { %v275_v57 = vpop.f32.mrb[0].mxu0 }
 0x153   :  { %v277_v58 = vpop.f32.mrb[1].mxu0  ;;  %v276_v21 = vadd.f32 %v275_v57, %v2064_v17 }
 0x154   :  { %v2043_v59 = vpop.f32.mrb[2].mxu0  ;;  %v278_v22 = vadd.f32 %v277_v58, %v2068_v18 }
 0x155   :  { %v2045_v61 = vpop.f32.mrb[3].mxu0  ;;  %v280_v13 = vadd.f32 %v2043_v59, %v2064_v17 }
 0x15a   :  { %v2049_v63 = vpop.f32.mrb[4].mxu0 }
 0x15b   :  { %v2051_v8 = vpop.f32.mrb[5].mxu0 }
 0x15c   :  { %v2053_v9 = vpop.f32.mrb[6].mxu0 }
 0x15d   :  { %v2056_v0 = vpop.f32.mrb[7].mxu0 }
 0x162   :  { %v2104_v47 = vpop.f32.mrb[8].mxu0 }
 0x163   :  { %v2107_v53 = vpop.f32.mrb[9].mxu0 }
 0x164   :  { %v2110_v54 = vpop.f32.mrb[10].mxu0 }
 0x165   :  { %v2112_v55 = vpop.f32.mrb[11].mxu0 }
 0x16a   :  { %v2120_v56 = vpop.f32.mrb[12].mxu0 }
 0x16b   :  { %v2122_v57 = vpop.f32.mrb[13].mxu0 }
 0x16c   :  { %v2124_v58 = vpop.f32.mrb[14].mxu0 }
 0x16d   :  { %v2126_v60 = vpop.f32.mrb[15].mxu0 }
 0x16f   :  { %v565_v25 = vpop.f32.mrb[0].mxu1 }
 0x170   :  { %v572_v26 = vadd.f32 %v565_v25, %v276_v21  ;;  %v567_v29 = vpop.f32.mrb[1].mxu1  ;;  %v282_v21 = vadd.f32 %v2045_v61, %v2068_v18  ;;  %v286_v61 = vadd.f32 %v2049_v63, %v2064_v17 }
 0x171   :  { %v573_v30 = vadd.f32 %v567_v29, %v278_v22  ;;  %v569_v34 = vpop.f32.mrb[2].mxu1 }
 0x172   :  { %1553 = vtanh.f32 %v572_v26  ;;  %v570_v35 = vpop.f32.mrb[3].mxu1 }
 0x173   :  { %1555 = vtanh.f32 %v573_v30 }
 0x17c   :  { %v2072_v37 = vpop.eup %1553 }
 0x17d   :  { %v2074_v38 = vpop.eup %1555  ;;  %v583_v42 = vpack.c.bf16 %v2072_v37, %v2072_v37 }
 0x17e   :  { %v584_v39 = vpack.c.bf16 %v2074_v38, %v2074_v38 }
 0x180   :  { %617 = vmatprep.mubr.bf16.mxu0 %v584_v39 }
 0x181   :  { %618 = vmatmul.mubr.bf16.vlgmr.msra.gmra.mrb[16].mxu0 %v583_v42 }
 0x182   :  { %694 = vmatpush1.bf16.msra.mxu0 %v1880_v2 }
 0x183   :  { %695 = vmatprep.subr.bf16.mxu0 %v1883_v3 }
 0x186   :  { %696 = vmatpush1.bf16.msra.mxu0 %v1886_v4 }
 0x187   :  { %697 = vmatprep.subr.bf16.mxu0 %v1889_v5 }
 0x18a   :  { %698 = vmatpush1.bf16.msra.mxu0 %v1892_v6 }
 0x18b   :  { %699 = vmatprep.subr.bf16.mxu0 %v1895_v7 }
 0x18e   :  { %700 = vmatpush1.bf16.msra.mxu0 %v1898_v10 }
 0x18f   :  { %701 = vmatprep.subr.bf16.mxu0 %v1900_v11 }
 0x192   :  { %702 = vmatpush1.bf16.msra.mxu0 %v1904_v14 }
 0x193   :  { %703 = vmatprep.subr.bf16.mxu0 %v1907_v16 }
 0x196   :  { %704 = vmatpush1.bf16.msra.mxu0 %v1910_v19 }
 0x197   :  { %705 = vmatprep.subr.bf16.mxu0 %v1913_v20 }
 0x19a   :  { %706 = vmatpush1.bf16.msra.mxu0 %v1916_v23 }
 0x19b   :  { %707 = vmatprep.subr.bf16.mxu0 %v1919_v24 }
 0x19e   :  { %708 = vmatpush1.bf16.msra.mxu0 %v1922_v27 }
 0x19f   :  { %709 = vmatprep.subr.bf16.mxu0 %v1925_v28 }
 0x1a2   :  { %710 = vmatpush1.bf16.msra.mxu0 %v1928_v31 }
 0x1a3   :  { %711 = vmatprep.subr.bf16.mxu0 %v1931_v32 }
 0x1a6   :  { %712 = vmatpush1.bf16.msra.mxu0 %v1933_v33 }
 0x1a7   :  { %713 = vmatprep.subr.bf16.mxu0 %v1935_v36 }
 0x1aa   :  { %714 = vmatpush1.bf16.msra.mxu0 %v1939_v40 }
 0x1ab   :  { %715 = vmatprep.subr.bf16.mxu0 %v1941_v41 }
 0x1ae   :  { %716 = vmatpush1.bf16.msra.mxu0 %v1945_v43 }
 0x1af   :  { %717 = vmatprep.subr.bf16.mxu0 %v1947_v44 }
 0x1b2   :  { %718 = vmatpush1.bf16.msra.mxu0 %v1956_v45 }
 0x1b3   :  { %719 = vmatprep.subr.bf16.mxu0 %v1959_v46 }
 0x1b6   :  { %720 = vmatpush1.bf16.msra.mxu0 %v1964_v48 }
 0x1b7   :  { %721 = vmatprep.subr.bf16.mxu0 %v1967_v49 }
 0x1ba   :  { %722 = vmatpush1.bf16.msra.mxu0 %v1973_v50 }
 0x1bb   :  { %723 = vmatprep.subr.bf16.mxu0 %v1976_v51 }
 0x1be   :  { %724 = vmatpush1.bf16.msra.mxu0 %v1981_v52 }
 0x1bf   :  { %801 = vmatprep.subr.bf16.mxu0 %v1878_v1 }
 0x254   :  { %v619_v22 = vpop.f32.mrb[16].mxu0 }
 0x255   :  { %v626_v25 = vadd.f32 %v619_v22, %v280_v13  ;;  %v621_v26 = vpop.f32.mrb[17].mxu0  ;;  %v288_v13 = vadd.f32 %v2051_v8, %v2068_v18  ;;  %v290_v8 = vadd.f32 %v2053_v9, %v2064_v17 }
 0x256   :  { %v627_v29 = vadd.f32 %v621_v26, %v282_v21  ;;  %v623_v30 = vpop.f32.mrb[18].mxu0 }
 0x257   :  { %1557 = vtanh.f32 %v626_v25  ;;  %v624_v34 = vpop.f32.mrb[19].mxu0 }
 0x258   :  { %1559 = vtanh.f32 %v627_v29 }
 0x261   :  { %v2132_v35 = vpop.eup %1557 }
 0x262   :  { %v2134_v39 = vpop.eup %1559  ;;  %v637_v59 = vpack.c.bf16 %v2132_v35, %v2132_v35 }
 0x263   :  { %v638_v42 = vpack.c.bf16 %v2134_v39, %v2134_v39 }
 0x265   :  { %671 = vmatprep.mubr.bf16.mxu1 %v638_v42 }
 0x266   :  { %672 = vmatmul.mubr.bf16.vlgmr.msra.gmra.mrb[4].mxu1 %v637_v59 }
 0x267   :  { %748 = vmatpush1.bf16.msra.mxu1 %v1880_v2 }
 0x268   :  { %749 = vmatprep.subr.bf16.mxu1 %v1883_v3 }
 0x26b   :  { %750 = vmatpush1.bf16.msra.mxu1 %v1886_v4 }
 0x26c   :  { %751 = vmatprep.subr.bf16.mxu1 %v1889_v5 }
 0x26f   :  { %752 = vmatpush1.bf16.msra.mxu1 %v1892_v6 }
 0x270   :  { %753 = vmatprep.subr.bf16.mxu1 %v1895_v7 }
 0x273   :  { %754 = vmatpush1.bf16.msra.mxu1 %v1898_v10 }
 0x274   :  { %755 = vmatprep.subr.bf16.mxu1 %v1900_v11 }
 0x277   :  { %756 = vmatpush1.bf16.msra.mxu1 %v1904_v14 }
 0x278   :  { %757 = vmatprep.subr.bf16.mxu1 %v1907_v16 }
 0x27b   :  { %758 = vmatpush1.bf16.msra.mxu1 %v1910_v19 }
 0x27c   :  { %759 = vmatprep.subr.bf16.mxu1 %v1913_v20 }
 0x27f   :  { %760 = vmatpush1.bf16.msra.mxu1 %v1916_v23 }
 0x280   :  { %761 = vmatprep.subr.bf16.mxu1 %v1919_v24 }
 0x283   :  { %762 = vmatpush1.bf16.msra.mxu1 %v1922_v27 }
 0x284   :  { %763 = vmatprep.subr.bf16.mxu1 %v1925_v28 }
 0x287   :  { %764 = vmatpush1.bf16.msra.mxu1 %v1928_v31 }
 0x288   :  { %765 = vmatprep.subr.bf16.mxu1 %v1931_v32 }
 0x28b   :  { %766 = vmatpush1.bf16.msra.mxu1 %v1933_v33 }
 0x28c   :  { %767 = vmatprep.subr.bf16.mxu1 %v1935_v36 }
 0x28f   :  { %768 = vmatpush1.bf16.msra.mxu1 %v1939_v40 }
 0x290   :  { %769 = vmatprep.subr.bf16.mxu1 %v1941_v41 }
 0x293   :  { %770 = vmatpush1.bf16.msra.mxu1 %v1945_v43 }
 0x294   :  { %771 = vmatprep.subr.bf16.mxu1 %v1947_v44 }
 0x297   :  { %772 = vmatpush1.bf16.msra.mxu1 %v1956_v45 }
 0x298   :  { %773 = vmatprep.subr.bf16.mxu1 %v1959_v46 }
 0x29b   :  { %774 = vmatpush1.bf16.msra.mxu1 %v1964_v48 }
 0x29c   :  { %775 = vmatprep.subr.bf16.mxu1 %v1967_v49 }
 0x29f   :  { %776 = vmatpush1.bf16.msra.mxu1 %v1973_v50 }
 0x2a0   :  { %777 = vmatprep.subr.bf16.mxu1 %v1976_v51 }
 0x2a3   :  { %778 = vmatpush1.bf16.msra.mxu1 %v1981_v52 }
 0x2a4   :  { %855 = vmatprep.subr.bf16.mxu1 %v1878_v1 }
 0x339   :  { %v673_v21 = vpop.f32.mrb[4].mxu1 }
 0x33a   :  { %v680_v22 = vadd.f32 %v673_v21, %v286_v61  ;;  %v675_v25 = vpop.f32.mrb[5].mxu1  ;;  %v292_v61 = vadd.f32 %v2056_v0, %v2068_v18  ;;  %v296_v0 = vadd.f32 %v2104_v47, %v2064_v17 }
 0x33b   :  { %v681_v26 = vadd.f32 %v675_v25, %v288_v13  ;;  %v677_v29 = vpop.f32.mrb[6].mxu1 }
 0x33c   :  { %1561 = vtanh.f32 %v680_v22  ;;  %v678_v30 = vpop.f32.mrb[7].mxu1 }
 0x33d   :  { %1563 = vtanh.f32 %v681_v26 }
 0x346   :  { %v2176_v34 = vpop.eup %1561 }
 0x347   :  { %v2178_v42 = vpop.eup %1563  ;;  %v691_v63 = vpack.c.bf16 %v2176_v34, %v2176_v34 }
 0x348   :  { %v692_v59 = vpack.c.bf16 %v2178_v42, %v2178_v42 }
 0x34a   :  { %725 = vmatprep.mubr.bf16.mxu0 %v692_v59 }
 0x34b   :  { %726 = vmatmul.mubr.bf16.vlgmr.msra.gmra.mrb[20].mxu0 %v691_v63  ;;  %v298_v63 = vadd.f32 %v2107_v53, %v2068_v18  ;;  %v1532_v53 = vld [vmem:[#allocation12 + $0x90] ss:$8 sps:$4 sm:$0xff]  }
 0x34c   :  { %802 = vmatpush1.bf16.msra.mxu0 %v1880_v2 }
 0x34d   :  { %803 = vmatprep.subr.bf16.mxu0 %v1883_v3 }
 0x350   :  { %804 = vmatpush1.bf16.msra.mxu0 %v1886_v4 }
 0x351   :  { %805 = vmatprep.subr.bf16.mxu0 %v1889_v5 }
 0x354   :  { %806 = vmatpush1.bf16.msra.mxu0 %v1892_v6 }
 0x355   :  { %807 = vmatprep.subr.bf16.mxu0 %v1895_v7 }
 0x358   :  { %808 = vmatpush1.bf16.msra.mxu0 %v1898_v10 }
 0x359   :  { %809 = vmatprep.subr.bf16.mxu0 %v1900_v11 }
 0x35c   :  { %810 = vmatpush1.bf16.msra.mxu0 %v1904_v14 }
 0x35d   :  { %811 = vmatprep.subr.bf16.mxu0 %v1907_v16 }
 0x360   :  { %812 = vmatpush1.bf16.msra.mxu0 %v1910_v19 }
 0x361   :  { %813 = vmatprep.subr.bf16.mxu0 %v1913_v20 }
 0x364   :  { %814 = vmatpush1.bf16.msra.mxu0 %v1916_v23 }
 0x365   :  { %815 = vmatprep.subr.bf16.mxu0 %v1919_v24 }
 0x368   :  { %816 = vmatpush1.bf16.msra.mxu0 %v1922_v27 }
 0x369   :  { %817 = vmatprep.subr.bf16.mxu0 %v1925_v28 }
 0x36c   :  { %818 = vmatpush1.bf16.msra.mxu0 %v1928_v31 }
 0x36d   :  { %819 = vmatprep.subr.bf16.mxu0 %v1931_v32 }
 0x370   :  { %820 = vmatpush1.bf16.msra.mxu0 %v1933_v33 }
 0x371   :  { %821 = vmatprep.subr.bf16.mxu0 %v1935_v36 }
 0x374   :  { %822 = vmatpush1.bf16.msra.mxu0 %v1939_v40 }
 0x375   :  { %823 = vmatprep.subr.bf16.mxu0 %v1941_v41 }
 0x378   :  { %824 = vmatpush1.bf16.msra.mxu0 %v1945_v43 }
 0x379   :  { %825 = vmatprep.subr.bf16.mxu0 %v1947_v44 }
 0x37c   :  { %826 = vmatpush1.bf16.msra.mxu0 %v1956_v45 }
 0x37d   :  { %827 = vmatprep.subr.bf16.mxu0 %v1959_v46 }
 0x380   :  { %828 = vmatpush1.bf16.msra.mxu0 %v1964_v48 }
 0x381   :  { %829 = vmatprep.subr.bf16.mxu0 %v1967_v49 }
 0x384   :  { %830 = vmatpush1.bf16.msra.mxu0 %v1973_v50 }
 0x385   :  { %831 = vmatprep.subr.bf16.mxu0 %v1976_v51 }
 0x388   :  { %832 = vmatpush1.bf16.msra.mxu0 %v1981_v52 }
 0x389   :  { %909 = vmatprep.subr.bf16.mxu0 %v1878_v1 }
 0x41e   :  { %v727_v13 = vpop.f32.mrb[20].mxu0 }
 0x41f   :  { %v734_v21 = vadd.f32 %v727_v13, %v290_v8  ;;  %v729_v22 = vpop.f32.mrb[21].mxu0 }
 0x420   :  { %v735_v25 = vadd.f32 %v729_v22, %v292_v61  ;;  %v731_v26 = vpop.f32.mrb[22].mxu0 }
 0x421   :  { %1565 = vtanh.f32 %v734_v21  ;;  %v732_v29 = vpop.f32.mrb[23].mxu0 }
 0x422   :  { %1567 = vtanh.f32 %v735_v25 }
 0x42b   :  { %v2220_v30 = vpop.eup %1565 }
 0x42c   :  { %v2222_v59 = vpop.eup %1567  ;;  %v745_v9 = vpack.c.bf16 %v2220_v30, %v2220_v30 }
 0x42d   :  { %v746_v1 = vpack.c.bf16 %v2222_v59, %v2222_v59 }
 0x42f   :  { %779 = vmatprep.mubr.bf16.mxu1 %v746_v1 }
 0x430   :  { %780 = vmatmul.mubr.bf16.vlgmr.msra.gmra.mrb[8].mxu1 %v745_v9  ;;  %v1538_v9 = vld [vmem:[#allocation12 + $0xb0] ss:$8 sps:$4 sm:$0xff]  }
 0x431   :  { %856 = vmatpush1.bf16.msra.mxu1 %v1880_v2 }
 0x432   :  { %857 = vmatprep.subr.bf16.mxu1 %v1883_v3 }
 0x435   :  { %858 = vmatpush1.bf16.msra.mxu1 %v1886_v4 }
 0x436   :  { %859 = vmatprep.subr.bf16.mxu1 %v1889_v5 }
 0x439   :  { %860 = vmatpush1.bf16.msra.mxu1 %v1892_v6 }
 0x43a   :  { %861 = vmatprep.subr.bf16.mxu1 %v1895_v7 }
 0x43d   :  { %862 = vmatpush1.bf16.msra.mxu1 %v1898_v10 }
 0x43e   :  { %863 = vmatprep.subr.bf16.mxu1 %v1900_v11 }
 0x441   :  { %864 = vmatpush1.bf16.msra.mxu1 %v1904_v14 }
 0x442   :  { %865 = vmatprep.subr.bf16.mxu1 %v1907_v16 }
 0x445   :  { %866 = vmatpush1.bf16.msra.mxu1 %v1910_v19 }
 0x446   :  { %867 = vmatprep.subr.bf16.mxu1 %v1913_v20 }
 0x449   :  { %868 = vmatpush1.bf16.msra.mxu1 %v1916_v23 }
 0x44a   :  { %869 = vmatprep.subr.bf16.mxu1 %v1919_v24 }
 0x44d   :  { %870 = vmatpush1.bf16.msra.mxu1 %v1922_v27 }
 0x44e   :  { %871 = vmatprep.subr.bf16.mxu1 %v1925_v28 }
 0x451   :  { %872 = vmatpush1.bf16.msra.mxu1 %v1928_v31 }
 0x452   :  { %873 = vmatprep.subr.bf16.mxu1 %v1931_v32 }
 0x455   :  { %874 = vmatpush1.bf16.msra.mxu1 %v1933_v33 }
 0x456   :  { %875 = vmatprep.subr.bf16.mxu1 %v1935_v36 }
 0x459   :  { %876 = vmatpush1.bf16.msra.mxu1 %v1939_v40 }
 0x45a   :  { %877 = vmatprep.subr.bf16.mxu1 %v1941_v41 }
 0x45d   :  { %878 = vmatpush1.bf16.msra.mxu1 %v1945_v43 }
 0x45e   :  { %879 = vmatprep.subr.bf16.mxu1 %v1947_v44 }
 0x461   :  { %880 = vmatpush1.bf16.msra.mxu1 %v1956_v45 }
 0x462   :  { %881 = vmatprep.subr.bf16.mxu1 %v1959_v46 }
 0x465   :  { %882 = vmatpush1.bf16.msra.mxu1 %v1964_v48 }
 0x466   :  { %883 = vmatprep.subr.bf16.mxu1 %v1967_v49 }
 0x469   :  { %884 = vmatpush1.bf16.msra.mxu1 %v1973_v50 }
 0x46a   :  { %885 = vmatprep.subr.bf16.mxu1 %v1976_v51 }
 0x46d   :  { %886 = vmatpush1.bf16.msra.mxu1 %v1981_v52 }
 0x503   :  { %v781_v8 = vpop.f32.mrb[8].mxu1 }
 0x504   :  { %v788_v61 = vadd.f32 %v781_v8, %v296_v0  ;;  %v783_v13 = vpop.f32.mrb[9].mxu1  ;;  %v1543_v0 = vld [vmem:[#allocation12 + $0xc4] ss:$8 sps:$4 sm:$0xff]   ;;  %v1546_v8 = vld [vmem:[#allocation12 + $0xd4] ss:$8 sps:$4 sm:$0xff]  }
 0x505   :  { %v789_v21 = vadd.f32 %v783_v13, %v298_v63  ;;  %v785_v22 = vpop.f32.mrb[10].mxu1  ;;  %v1541_v63 = vld [vmem:[#allocation12 + $0xc0] ss:$8 sps:$4 sm:$0xff]   ;;  %v1549_v13 = vld [vmem:[#allocation12 + $0xe4] ss:$8 sps:$4 sm:$0xff]  }
 0x506   :  { %1569 = vtanh.f32 %v788_v61  ;;  %v786_v25 = vpop.f32.mrb[11].mxu1  ;;  %v1544_v61 = vld [vmem:[#allocation12 + $0xd0] ss:$8 sps:$4 sm:$0xff]   ;;  %v1552_v22 = vld [vmem:[#allocation12 + $0xf4] ss:$8 sps:$4 sm:$0xff]  }
 0x507   :  { %1571 = vtanh.f32 %v789_v21  ;;  %v1547_v21 = vld [vmem:[#allocation12 + $0xe0] ss:$8 sps:$4 sm:$0xff]   ;;  %v1550_v25 = vld [vmem:[#allocation12 + $0xf0] ss:$8 sps:$4 sm:$0xff]  }
 0x510   :  { %v2263_v26 = vpop.eup %1569 }
 0x511   :  { %v2265_v29 = vpop.eup %1571  ;;  %v799_v47 = vpack.c.bf16 %v2263_v26, %v2263_v26 }
 0x512   :  { %v800_v1 = vpack.c.bf16 %v2265_v29, %v2265_v29 }
 0x514   :  { %833 = vmatprep.mubr.bf16.mxu0 %v800_v1  ;;  %v974_v1 = vpack.c.bf16 %v2132_v35, %v2072_v37  ;;  %v306_v37 = vadd.f32 %v2120_v56, %v2064_v17  ;;  %v308_v35 = vadd.f32 %v2122_v57, %v2068_v18  ;;  %v1030_v56 = vld [vmem:[%s2391_s6] sm:$0x3]  ;;  %s1759_s6 = smov [#allocation14]  }
 0x515   :  { %834 = vmatmul.mubr.bf16.vlgmr.msra.gmra.mrb[24].mxu0 %v799_v47  ;;  %v977_v47 = vpack.c.bf16 %v2222_v59, %v2178_v42  ;;  %v2335_v57 = vrot.slane %v1030_v56, %v129_v12  ;;  %s1309_s22 = sshll.u32 %s1759_s6, 4  ;;  %s1310_s22 = int_to_ptr.vmem [resolvable:$true] %s1309_s22 }
 0x516   :  { %910 = vmatpush1.bf16.msra.mxu0 %v1880_v2  ;;  %v1507_v2 = vld [vmem:[#allocation12 + $0x4] ss:$8 sps:$4 sm:$0xff]   ;;  %s1695_s23 = scalar_lea.vmem %s1310_s22, 256  ;;  %p1700_p13 = scmp.lt.s32.totalorder %s1310_s22, %s1310_s22 }
 0x517   :  { %911 = vmatprep.subr.bf16.mxu0 %v1883_v3  ;;  %1202 = vmatprep.subr.bf16.mxu1 %v1507_v2  ;;  %v300_v3 = vadd.f32 %v2110_v54, %v2064_v17  ;;  %v1537_v54 = vld [vmem:[#allocation12 + $0xa4] ss:$8 sps:$4 sm:$0xff]   ;;  %v976_v2 = vpack.c.bf16 %v2220_v30, %v2176_v34  ;;  %p1696_p12 = scmp.ne.s32.totalorder %s1310_s22, %s1695_s23  ;;  %p1701_p0 = scmp.lt.s32.totalorder %s1695_s23, %s1695_s23 }
 0x519   :  { %p1702_p1 = por %p1701_p0, %p1700_p13 }
 0x51a   :  { %912 = vmatpush1.bf16.msra.mxu0 %v1886_v4  ;;  %v302_v4 = vadd.f32 %v2112_v55, %v2068_v18  ;;  %v1535_v55 = vld [vmem:[#allocation12 + $0xa0] ss:$8 sps:$4 sm:$0xff]  }
 0x51b   :  { %913 = vmatprep.subr.bf16.mxu0 %v1889_v5  ;;  %p1703_p2 = pnand %p1702_p1, %p1696_p12 }
 0x51e   :  { %914 = vmatpush1.bf16.msra.mxu0 %v1892_v6 }
 0x51f   :  { %915 = vmatprep.subr.bf16.mxu0 %v1895_v7 }
 0x522   :  { %916 = vmatpush1.bf16.msra.mxu0 %v1898_v10 }
 0x523   :  { %917 = vmatprep.subr.bf16.mxu0 %v1900_v11 }
 0x526   :  { %918 = vmatpush1.bf16.msra.mxu0 %v1904_v14 }
 0x527   :  { %919 = vmatprep.subr.bf16.mxu0 %v1907_v16 }
 0x52a   :  { %920 = vmatpush1.bf16.msra.mxu0 %v1910_v19 }
 0x52b   :  { %921 = vmatprep.subr.bf16.mxu0 %v1913_v20 }
 0x52e   :  { %922 = vmatpush1.bf16.msra.mxu0 %v1916_v23  ;;  %v1505_v23 = vld [vmem:[#allocation12] ss:$8 sps:$4 sm:$0xff]  }
 0x52f   :  { %923 = vmatprep.subr.bf16.mxu0 %v1919_v24 }
 0x532   :  { %924 = vmatpush1.bf16.msra.mxu0 %v1922_v27  ;;  %v1510_v27 = vld [vmem:[#allocation12 + $0x14] ss:$8 sps:$4 sm:$0xff]  }
 0x533   :  { %925 = vmatprep.subr.bf16.mxu0 %v1925_v28  ;;  %v975_v28 = vpack.c.bf16 %v2134_v39, %v2074_v38  ;;  %v1534_v38 = vld [vmem:[#allocation12 + $0x94] ss:$8 sps:$4 sm:$0xff]  }
 0x534   :  { %v1540_v39 = vld [vmem:[#allocation12 + $0xb4] ss:$8 sps:$4 sm:$0xff]  }
 0x536   :  { %926 = vmatpush1.bf16.msra.mxu0 %v1928_v31  ;;  %v1508_v31 = vld [vmem:[#allocation12 + $0x10] ss:$8 sps:$4 sm:$0xff]  }
 0x537   :  { %927 = vmatprep.subr.bf16.mxu0 %v1931_v32  ;;  %v1513_v32 = vld [vmem:[#allocation12 + $0x24] ss:$8 sps:$4 sm:$0xff]  }
 0x53a   :  { %928 = vmatpush1.bf16.msra.mxu0 %v1933_v33  ;;  %v1511_v33 = vld [vmem:[#allocation12 + $0x20] ss:$8 sps:$4 sm:$0xff]  }
 0x53b   :  { %929 = vmatprep.subr.bf16.mxu0 %v1935_v36  ;;  %v1516_v36 = vld [vmem:[#allocation12 + $0x34] ss:$8 sps:$4 sm:$0xff]  }
 0x53e   :  { %930 = vmatpush1.bf16.msra.mxu0 %v1939_v40  ;;  %v1514_v40 = vld [vmem:[#allocation12 + $0x30] ss:$8 sps:$4 sm:$0xff]  }
 0x53f   :  { %931 = vmatprep.subr.bf16.mxu0 %v1941_v41  ;;  %v1519_v41 = vld [vmem:[#allocation12 + $0x44] ss:$8 sps:$4 sm:$0xff]  }
 0x542   :  { %932 = vmatpush1.bf16.msra.mxu0 %v1945_v43  ;;  %v1517_v43 = vld [vmem:[#allocation12 + $0x40] ss:$8 sps:$4 sm:$0xff]  }
 0x543   :  { %933 = vmatprep.subr.bf16.mxu0 %v1947_v44  ;;  %v1522_v44 = vld [vmem:[#allocation12 + $0x54] ss:$8 sps:$4 sm:$0xff]  }
 0x546   :  { %934 = vmatpush1.bf16.msra.mxu0 %v1956_v45  ;;  %v1520_v45 = vld [vmem:[#allocation12 + $0x50] ss:$8 sps:$4 sm:$0xff]  }
 0x547   :  { %935 = vmatprep.subr.bf16.mxu0 %v1959_v46  ;;  %v1525_v46 = vld [vmem:[#allocation12 + $0x64] ss:$8 sps:$4 sm:$0xff]  }
 0x54a   :  { %936 = vmatpush1.bf16.msra.mxu0 %v1964_v48  ;;  %v1523_v48 = vld [vmem:[#allocation12 + $0x60] ss:$8 sps:$4 sm:$0xff]  }
 0x54b   :  { %937 = vmatprep.subr.bf16.mxu0 %v1967_v49  ;;  %v1528_v49 = vld [vmem:[#allocation12 + $0x74] ss:$8 sps:$4 sm:$0xff]  }
 0x54e   :  { %938 = vmatpush1.bf16.msra.mxu0 %v1973_v50  ;;  %v1526_v50 = vld [vmem:[#allocation12 + $0x70] ss:$8 sps:$4 sm:$0xff]  }
 0x54f   :  { %939 = vmatprep.subr.bf16.mxu0 %v1976_v51  ;;  %v1531_v51 = vld [vmem:[#allocation12 + $0x84] ss:$8 sps:$4 sm:$0xff]  }
 0x552   :  { %940 = vmatpush1.bf16.msra.mxu0 %v1981_v52  ;;  %v1529_v52 = vld [vmem:[#allocation12 + $0x80] ss:$8 sps:$4 sm:$0xff]  }
 0x5e8   :  { %v835_v5 = vpop.f32.mrb[24].mxu0 }
 0x5e9   :  { %v842_v6 = vadd.f32 %v835_v5, %v300_v3  ;;  %v837_v7 = vpop.f32.mrb[25].mxu0 }
 0x5ea   :  { %v843_v10 = vadd.f32 %v837_v7, %v302_v4  ;;  %v839_v11 = vpop.f32.mrb[26].mxu0 }
 0x5eb   :  { %1573 = vtanh.f32 %v842_v6  ;;  %v840_v14 = vpop.f32.mrb[27].mxu0 }
 0x5ec   :  { %1575 = vtanh.f32 %v843_v10 }
 0x5f5   :  { %v2306_v16 = vpop.eup %1573 }
 0x5f6   :  { %v2308_v19 = vpop.eup %1575  ;;  %v853_v24 = vpack.c.bf16 %v2306_v16, %v2306_v16  ;;  %v978_v4 = vpack.c.bf16 %v2306_v16, %v2263_v26  ;;  %v2339_v26 = vrot.slane %v1030_v56, %v133_v15 }
 0x5f7   :  { %v854_v20 = vpack.c.bf16 %v2308_v19, %v2308_v19  ;;  %v979_v3 = vpack.c.bf16 %v2308_v19, %v2265_v29 }
 0x5f9   :  { %887 = vmatprep.mubr.bf16.mxu1 %v854_v20 }
 0x5fa   :  { %888 = vmatmul.mubr.bf16.vlgmr.msra.gmra.mrb[12].mxu1 %v853_v24 }
 0x5fb   :  { %1203 = vmatpush1.bf16.msra.mxu1 %v1505_v23  ;;  %1234 = vmatprep.mubr.bf16.mxu1 %v975_v28 }
 0x5fc   :  { %1204 = vmatprep.subr.bf16.mxu1 %v1510_v27 }
 0x5ff   :  { %1205 = vmatpush1.bf16.msra.mxu1 %v1508_v31 }
 0x600   :  { %1206 = vmatprep.subr.bf16.mxu1 %v1513_v32 }
 0x603   :  { %1207 = vmatpush1.bf16.msra.mxu1 %v1511_v33 }
 0x604   :  { %1208 = vmatprep.subr.bf16.mxu1 %v1516_v36 }
 0x607   :  { %1209 = vmatpush1.bf16.msra.mxu1 %v1514_v40 }
 0x608   :  { %1210 = vmatprep.subr.bf16.mxu1 %v1519_v41 }
 0x60b   :  { %1211 = vmatpush1.bf16.msra.mxu1 %v1517_v43 }
 0x60c   :  { %1212 = vmatprep.subr.bf16.mxu1 %v1522_v44 }
 0x60f   :  { %1213 = vmatpush1.bf16.msra.mxu1 %v1520_v45 }
 0x610   :  { %1214 = vmatprep.subr.bf16.mxu1 %v1525_v46 }
 0x613   :  { %1215 = vmatpush1.bf16.msra.mxu1 %v1523_v48 }
 0x614   :  { %1216 = vmatprep.subr.bf16.mxu1 %v1528_v49 }
 0x617   :  { %1217 = vmatpush1.bf16.msra.mxu1 %v1526_v50 }
 0x618   :  { %1218 = vmatprep.subr.bf16.mxu1 %v1531_v51  ;;  %v310_v51 = vadd.f32 %v2124_v58, %v2064_v17 }
 0x61b   :  { %1219 = vmatpush1.bf16.msra.mxu1 %v1529_v52  ;;  %v312_v52 = vadd.f32 %v2126_v60, %v2068_v18 }
 0x61c   :  { %1220 = vmatprep.subr.bf16.mxu1 %v1534_v38 }
 0x61f   :  { %1221 = vmatpush1.bf16.msra.mxu1 %v1532_v53 }
 0x620   :  { %1222 = vmatprep.subr.bf16.mxu1 %v1537_v54 }
 0x623   :  { %1223 = vmatpush1.bf16.msra.mxu1 %v1535_v55 }
 0x624   :  { %1224 = vmatprep.subr.bf16.mxu1 %v1540_v39 }
 0x627   :  { %1225 = vmatpush1.bf16.msra.mxu1 %v1538_v9 }
 0x628   :  { %1226 = vmatprep.subr.bf16.mxu1 %v1543_v0 }
 0x62b   :  { %1227 = vmatpush1.bf16.msra.mxu1 %v1541_v63 }
 0x62c   :  { %1228 = vmatprep.subr.bf16.mxu1 %v1546_v8 }
 0x62f   :  { %1229 = vmatpush1.bf16.msra.mxu1 %v1544_v61 }
 0x630   :  { %1230 = vmatprep.subr.bf16.mxu1 %v1549_v13 }
 0x633   :  { %1231 = vmatpush1.bf16.msra.mxu1 %v1547_v21 }
 0x634   :  { %1232 = vmatprep.subr.bf16.mxu1 %v1552_v22 }
 0x637   :  { %1233 = vmatpush1.bf16.msra.mxu1 %v1550_v25 }
 0x63a   :  { %1235 = vmatmul.mubr.bf16.vlgmr.msra.gmra.mrb[16].mxu1 %v974_v1 }
 0x63b   :  { %1244 = vmatprep.mubr.bf16.mxu1 %v977_v47 }
 0x642   :  { %1245 = vmatmul.mubr.bf16.gmra.mrb[20].mxu1 %v976_v2 }
 0x643   :  { %1254 = vmatprep.mubr.bf16.mxu1 %v979_v3 }
 0x64a   :  { %1255 = vmatmul.mubr.bf16.gmra.mrb[24].mxu1 %v978_v4 }
 0x6cd   :  { %v889_v42 = vpop.f32.mrb[12].mxu1 }
 0x6ce   :  { %v896_v59 = vadd.f32 %v889_v42, %v306_v37  ;;  %v891_v5 = vpop.f32.mrb[13].mxu1 }
 0x6cf   :  { %v897_v6 = vadd.f32 %v891_v5, %v308_v35  ;;  %v893_v34 = vpop.f32.mrb[14].mxu1 }
 0x6d0   :  { %1577 = vtanh.f32 %v896_v59  ;;  %v894_v30 = vpop.f32.mrb[15].mxu1 }
 0x6d1   :  { %1579 = vtanh.f32 %v897_v6 }
 0x6da   :  { %v1578_v29 = vpop.eup %1577 }
 0x6db   :  { %v1580_v7 = vpop.eup %1579  ;;  %v907_v11 = vpack.c.bf16 %v1578_v29, %v1578_v29 }
 0x6dc   :  { %v908_v10 = vpack.c.bf16 %v1580_v7, %v1580_v7 }
 0x6de   :  { %941 = vmatprep.mubr.bf16.mxu0 %v908_v10 }
 0x6df   :  { %942 = vmatmul.mubr.bf16.vlgmr.msra.gmra.mrb[28].mxu0 %v907_v11 }
 0x70d   :  { %v1236_v14 = vpop.f32.mrb[16].mxu1 }
 0x70e   :  { %v1237_v16 = vadd.f32 %v1236_v14, %v2335_v57  ;;  %v1238_v19 = vpop.f32.mrb[17].mxu1 }
 0x70f   :  { %v1239_v20 = vadd.f32 %v1238_v19, %v2339_v26  ;;  %v1240_v23 = vpop.f32.mrb[18].mxu1 }
 0x710   :  { %1275 = vst [vmem:[#allocation13] sm:$0xff] %v1237_v16  ;;  %v1241_v24 = vadd.f32 %v1240_v23, %v2335_v57  ;;  %v1242_v27 = vpop.f32.mrb[19].mxu1 }
 0x711   :  { %1276 = vst [vmem:[#allocation13 + $0x8] sm:$0xff] %v1239_v20  ;;  %v1243_v28 = vadd.f32 %v1242_v27, %v2339_v26 }
 0x712   :  { %1277 = vst [vmem:[#allocation13 + $0x10] sm:$0xff] %v1241_v24 }
 0x713   :  { %1278 = vst [vmem:[#allocation13 + $0x18] sm:$0xff] %v1243_v28 }
 0x715   :  { %v1246_v12 = vpop.f32.mrb[20].mxu1 }
 0x716   :  { %v1247_v62 = vadd.f32 %v1246_v12, %v2335_v57  ;;  %v1248_v15 = vpop.f32.mrb[21].mxu1 }
 0x717   :  { %v1249_v31 = vadd.f32 %v1248_v15, %v2339_v26  ;;  %v1250_v32 = vpop.f32.mrb[22].mxu1 }
 0x718   :  { %1279 = vst [vmem:[#allocation13 + $0x20] sm:$0xff] %v1247_v62  ;;  %v1251_v33 = vadd.f32 %v1250_v32, %v2335_v57  ;;  %v1252_v36 = vpop.f32.mrb[23].mxu1 }
 0x719   :  { %1280 = vst [vmem:[#allocation13 + $0x28] sm:$0xff] %v1249_v31  ;;  %v1253_v40 = vadd.f32 %v1252_v36, %v2339_v26 }
 0x71a   :  { %1281 = vst [vmem:[#allocation13 + $0x30] sm:$0xff] %v1251_v33 }
 0x71b   :  { %1282 = vst [vmem:[#allocation13 + $0x38] sm:$0xff] %v1253_v40 }
 0x71d   :  { %v1256_v41 = vpop.f32.mrb[24].mxu1 }
 0x71e   :  { %v1257_v43 = vadd.f32 %v1256_v41, %v2335_v57  ;;  %v1258_v44 = vpop.f32.mrb[25].mxu1 }
 0x71f   :  { %v1259_v45 = vadd.f32 %v1258_v44, %v2339_v26  ;;  %v1260_v46 = vpop.f32.mrb[26].mxu1 }
 0x720   :  { %1283 = vst [vmem:[#allocation13 + $0x40] sm:$0xff] %v1257_v43  ;;  %v1261_v48 = vadd.f32 %v1260_v46, %v2335_v57  ;;  %v1262_v49 = vpop.f32.mrb[27].mxu1 }
 0x721   :  { %1284 = vst [vmem:[#allocation13 + $0x48] sm:$0xff] %v1259_v45  ;;  %v1263_v50 = vadd.f32 %v1262_v49, %v2339_v26 }
 0x722   :  { %1285 = vst [vmem:[#allocation13 + $0x50] sm:$0xff] %v1261_v48 }
 0x723   :  { %1286 = vst [vmem:[#allocation13 + $0x58] sm:$0xff] %v1263_v50 }
 0x7b2   :  { %v943_v38 = vpop.f32.mrb[28].mxu0 }
 0x7b3   :  { %v950_v53 = vadd.f32 %v943_v38, %v310_v51  ;;  %v945_v54 = vpop.f32.mrb[29].mxu0 }
 0x7b4   :  { %v951_v55 = vadd.f32 %v945_v54, %v312_v52  ;;  %v947_v39 = vpop.f32.mrb[30].mxu0 }
 0x7b5   :  { %1581 = vtanh.f32 %v950_v53  ;;  %v948_v9 = vpop.f32.mrb[31].mxu0 }
 0x7b6   :  { %1583 = vtanh.f32 %v951_v55 }
 0x7bf   :  { %v1582_v0 = vpop.eup %1581 }
 0x7c0   :  { %v1584_v63 = vpop.eup %1583  ;;  %956 = vst [vmem:[#allocation14] sm:$0xff] %v1582_v0  ;;  %v980_v61 = vpack.c.bf16 %v1582_v0, %v1578_v29 }
 0x7c1   :  { %957 = vst [vmem:[#allocation14 + $0x8] sm:$0xff] %v1584_v63  ;;  %v981_v8 = vpack.c.bf16 %v1584_v63, %v1580_v7 }
 0x7c3   :  { %1264 = vmatprep.mubr.bf16.mxu1 %v981_v8 }
 0x7c4   :  { %1265 = vmatmul.mubr.bf16.gmra.mrb[28].mxu1 %v980_v61 }
 0x7c5   :  { %1706 = shalt.err (!%p1703_p2)
}
 0x7c6   :  { %s1707_s26 = scalar_lea.hbm %s2393_s8, 256 }
 0x7c7   :  { %p1708_p3 = scmp.ne.s32.totalorder %s2393_s8, %s1707_s26  ;;  %p1711_p4 = scmp.lt.u32.totalorder %s1707_s26, %s2393_s8 }
 0x7c9   :  { %p1713_p5 = pnand %p1711_p4, %p1708_p3 }
 0x7cb   :  { %1716 = shalt.err (!%p1713_p5)
}
 0x7cc   :  { %1312 = dma.vmem_to_hbm [thread:$0]  %s1310_s22, 256, %s2393_s8, [#allocation15]  }
 0x7cd   :  { %s1760_s0 = smov [#allocation13]  }
 0x7ce   :  { %s1296_s20 = sshll.u32 %s1760_s0, 4  ;;  %s1297_s20 = int_to_ptr.vmem [resolvable:$true] %s1296_s20 }
 0x7cf   :  { %s1717_s8 = scalar_lea.vmem %s1297_s20, 2048  ;;  %p1722_p7 = scmp.lt.s32.totalorder %s1297_s20, %s1297_s20 }
 0x7d0   :  { %p1718_p6 = scmp.ne.s32.totalorder %s1297_s20, %s1717_s8  ;;  %p1723_p8 = scmp.lt.s32.totalorder %s1717_s8, %s1717_s8 }
 0x7d2   :  { %p1724_p9 = por %p1723_p8, %p1722_p7 }
 0x7d4   :  { %p1725_p10 = pnand %p1724_p9, %p1718_p6 }
 0x897   :  { %v1266_v17 = vpop.f32.mrb[28].mxu1 }
 0x898   :  { %v1267_v18 = vadd.f32 %v1266_v17, %v2335_v57  ;;  %v1268_v58 = vpop.f32.mrb[29].mxu1 }
 0x899   :  { %v1269_v60 = vadd.f32 %v1268_v58, %v2339_v26  ;;  %v1270_v13 = vpop.f32.mrb[30].mxu1 }
 0x89a   :  { %1287 = vst [vmem:[#allocation13 + $0x60] sm:$0xff] %v1267_v18  ;;  %v1271_v21 = vadd.f32 %v1270_v13, %v2335_v57  ;;  %v1272_v22 = vpop.f32.mrb[31].mxu1 }
 0x89b   :  { %1288 = vst [vmem:[#allocation13 + $0x68] sm:$0xff] %v1269_v60  ;;  %v1273_v25 = vadd.f32 %v1272_v22, %v2339_v26 }
 0x89c   :  { %1289 = vst [vmem:[#allocation13 + $0x70] sm:$0xff] %v1271_v21 }
 0x89d   :  { %1290 = vst [vmem:[#allocation13 + $0x78] sm:$0xff] %v1273_v25 }
 0x89e   :  { %1728 = shalt.err (!%p1725_p10)
}
 0x89f   :  { %s1729_s14 = scalar_lea.hbm %s2392_s7, 2048 }
 0x8a0   :  { %p1730_p11 = scmp.ne.s32.totalorder %s2392_s7, %s1729_s14  ;;  %p1733_p12 = scmp.lt.u32.totalorder %s1729_s14, %s2392_s7 }
 0x8a2   :  { %p1735_p13 = pnand %p1733_p12, %p1730_p11 }
 0x8a4   :  { %1738 = shalt.err (!%p1735_p13)
}
 0x8a5   :  { %s1761_s18 = smov 256   ;;  %s1762_s19 = smov 16  }
 0x8a6   :  { %1302 = dma.vmem_to_hbm [thread:$0]  %s1297_s20, 2048, %s2392_s7, [#allocation6], %s1761_s18, %s1761_s18, %s1762_s19  }
 0x8a7   :  { %1745 = dma.done.wait [#allocation6], 2048  }
 0x8a8   :  { %1746 = vsyncadd [#allocation6], 4294965248 }
 0x8a9   :  { %1747 = dma.done.wait [#allocation15], 256  }
 0x8aa   :  { %1748 = vsyncadd [#allocation15], 4294967040 }
 0x8ab   :  { %1319 = vsyncpa [#allocation5], 1 }
 0x8ac   :  { %1320 = vsyncpa [#allocation8], 1 }
 0x8ad   :  { %1321 = vsyncpa [#allocation11], 1 }
 0x8ae   :  { %1322 = vsyncpa [#allocation6], 1 }
 0x8af   :  { %1323 = vsyncpa [#allocation15], 1 }

</bundles_post_ra>
